<compile_context>
chip_gen: v5e
topology: v5e:2x2
jax: 0.10.0
libtpu: 0.0.40
codegen_flags: <defaults>
</compile_context>

<pallas_src>
import functools

import numpy as np
import jax
import jax.numpy as jnp
from jax import lax
from jax.experimental import pallas as pl
from jax.experimental.pallas import tpu as pltpu


def _round_up(x, m):
    return ((x + m - 1) // m) * m


# ----------------------------------------------------------------------------
# Pallas kernel: nearest-neighbour ray-marching line integral over one chunk
# of the flattened volume.
# ----------------------------------------------------------------------------
def _drr_nearest_kernel(kmin_ref, kmax_ref, step_ref, start_ref, vol_ref, out_ref, *,
                        vol_shape, chunk_elems, n_chunks, n_tiles, out_scale):
    """One (batch, channel, detector-row-tile, volume-chunk) program.

    kmin_ref/kmax_ref : (B*n_tiles*n_chunks,) int32 in SMEM (scalar prefetch):
                        per (b, tile, chunk) ray-march step range [k_lo, k_hi).
    step_ref  : (1, 3, TU, V) per-pixel step vector in voxel coords (VMEM)
    start_ref : (1, 3, TU, V) per-pixel ray start (source) in voxel coords
    vol_ref   : (1, 1, 1, 1, CHE) one chunk of the flattened (padded) volume
    out_ref   : (1, 1, TU, V) projection tile, accumulated across the chunk axis
    """
    D, H, W = vol_shape
    CHE = chunk_elems

    b = pl.program_id(0)
    t = pl.program_id(2)
    ch = pl.program_id(3)

    # Init the resident accumulator tile on the first chunk.
    @pl.when(ch == 0)
    def _init():
        out_ref[...] = jnp.zeros_like(out_ref)

    flat = (b * n_tiles + t) * n_chunks + ch
    k_lo = kmin_ref[flat]
    k_hi = kmax_ref[flat]

    sx = step_ref[0, 0]           # (TU, V)
    sy = step_ref[0, 1]
    sz = step_ref[0, 2]
    p0x = start_ref[0, 0]
    p0y = start_ref[0, 1]
    p0z = start_ref[0, 2]

    # Loop invariants (hoisted out of the ray-march loop).
    vol3 = vol_ref[0, 0, 0][None]                                 # (1, 1, CHE)
    lane = lax.broadcasted_iota(jnp.int32, (1, 1, CHE), 2)        # chunk-local idx
    base = ch * CHE                                               # chunk offset

    def body(k, acc):
        tf = k.astype(jnp.float32)
        # Positions are recomputed from p0 + s*k (not carried incrementally) so
        # the nearest-neighbour rounding matches the reference bit-for-bit.
        ix = jnp.floor(p0x + sx * tf + 0.5).astype(jnp.int32)
        iy = jnp.floor(p0y + sy * tf + 0.5).astype(jnp.int32)
        iz = jnp.floor(p0z + sz * tf + 0.5).astype(jnp.int32)
        inb = ((ix >= 0) & (ix < D) &
               (iy >= 0) & (iy < H) &
               (iz >= 0) & (iz < W))
        lin = (ix * H + iy) * W + iz
        loc = jnp.where(inb, lin - base, -1)          # OOB / other-chunk -> no match
        match = loc[:, :, None] == lane               # (TU, V, CHE)
        samp = jnp.sum(jnp.where(match, vol3, 0.0), axis=-1)      # (TU, V)
        return acc + samp

    acc = lax.fori_loop(k_lo, k_hi, body, jnp.zeros(sx.shape, jnp.float32))
    out_ref[0, 0] = out_ref[0, 0] + acc

    # Apply step_size/10 scaling once, after the last chunk.
    @pl.when(ch == n_chunks - 1)
    def _finalize():
        out_ref[...] = out_ref[...] * out_scale


# ----------------------------------------------------------------------------
# Wrapper-side precompute: per (batch, detector-row-tile, chunk) step ranges
# ----------------------------------------------------------------------------
def _k_ranges(steps, starts, n_steps, vol_shape, TU, CHE, NCH):
    """Returns flat int32 arrays kmin, kmax of shape (B*n_tiles*NCH,)."""
    D, H, W = vol_shape
    B, _, U, V = steps.shape
    n_tiles = U // TU

    k = jnp.arange(n_steps, dtype=jnp.float32)                     # (K,)
    pts = starts[..., None] + steps[..., None] * k                 # (B,3,U,V,K)
    idx = jnp.floor(pts + 0.5).astype(jnp.int32)
    ix, iy, iz = idx[:, 0], idx[:, 1], idx[:, 2]                   # (B,U,V,K)
    inb = ((ix >= 0) & (ix < D) & (iy >= 0) & (iy < H) &
           (iz >= 0) & (iz < W))
    lin = (ix * H + iy) * W + iz
    big = NCH * CHE + 1
    lin_min = jnp.where(inb, lin, big)
    lin_max = jnp.where(inb, lin, -1)
    lin_min = lin_min.reshape(B, n_tiles, TU, V, n_steps).min(axis=(2, 3))  # (B,T,K)
    lin_max = lin_max.reshape(B, n_tiles, TU, V, n_steps).max(axis=(2, 3))

    ch_lo = jnp.arange(NCH, dtype=jnp.int32) * CHE                 # (NCH,)
    ch_hi = ch_lo + CHE
    overlap = ((lin_min[:, :, None, :] < ch_hi[None, None, :, None]) &
               (lin_max[:, :, None, :] >= ch_lo[None, None, :, None]))  # (B,T,NCH,K)

    karr = jnp.arange(n_steps, dtype=jnp.int32)
    kmin = jnp.where(overlap, karr, n_steps).min(axis=-1).astype(jnp.int32)
    kmax = jnp.where(overlap, karr + 1, 0).max(axis=-1).astype(jnp.int32)
    return kmin.reshape(-1), kmax.reshape(-1)


# ----------------------------------------------------------------------------
# Module equivalent
# ----------------------------------------------------------------------------
class DRRAverageProjectorPallas:
    def __init__(self,
                 volume_shape=(128, 128, 128),
                 detector_shape=(128, 128),
                 voxel_size=(1.0, 1.0, 1.0),
                 pixel_size=(1.5, 1.5),
                 step_size=0.1,
                 source_to_detector_distance=1500.0,
                 isocenter_distance=1000.0,
                 source_offset=(0.0, 0.0, 0.0),
                 detector_offset=(0.0, 0.0),
                 interp='nearest',
                 max_abs_translation=10.0,
                 chunk_elems=1024):
        if np.isscalar(volume_shape):
            volume_shape = (volume_shape,) * 3
        if np.isscalar(detector_shape):
            detector_shape = (detector_shape,) * 2
        if np.isscalar(voxel_size):
            voxel_size = (voxel_size,) * 3
        if np.isscalar(pixel_size):
            pixel_size = (pixel_size,) * 2
        if np.isscalar(source_offset):
            source_offset = (source_offset,) * 3
        if np.isscalar(detector_offset):
            detector_offset = (detector_offset,) * 2
        if interp != 'nearest':
            raise NotImplementedError("only interp='nearest' is implemented")

        K = np.zeros((3, 3), np.float32)
        K[0, 0] = source_to_detector_distance / pixel_size[0]
        K[1, 1] = source_to_detector_distance / pixel_size[1]
        K[0, 2] = detector_shape[0] / 2.0 - detector_offset[0] / pixel_size[0]
        K[1, 2] = detector_shape[1] / 2.0 - detector_offset[1] / pixel_size[1]
        K[2, 2] = 1.0
        self.K_inv = np.linalg.inv(K).astype(np.float32)

        self.voxel_size_inv = np.diag(1.0 / np.asarray(voxel_size, np.float32)).astype(np.float32)
        self.voxel_size = np.asarray(voxel_size, np.float32)
        self.source_offset = np.asarray(source_offset, np.float32)
        self.volume_offset = (np.asarray(volume_shape, np.float32) * 0.5
                              - self.voxel_size_inv @ self.source_offset)
        self.isocenter_distance = float(isocenter_distance)
        self.volume_shape = tuple(int(s) for s in volume_shape)
        self.detector_shape = tuple(int(s) for s in detector_shape)
        self.step_size = float(step_size)
        self.interp = interp

        # --- static ray-march step bound (geometry constants only; jit-safe) ---
        half_diag = 0.5 * float(np.linalg.norm(
            np.asarray(self.volume_shape, np.float32) * self.voxel_size))
        src_dist = (self.isocenter_distance
                    + np.sqrt(3.0) * float(max_abs_translation)
                    + float(np.linalg.norm(self.source_offset)))
        self.n_steps = int(np.ceil((src_dist + half_diag) / self.step_size)) + 2

        # --- chunking / tiling parameters ---
        D, H, W = self.volume_shape
        U, V = self.detector_shape
        DHW = D * H * W
        CHE = min(_round_up(DHW, 128), int(chunk_elems))
        CHE = _round_up(CHE, 128)
        self._CHE = CHE
        self._DHW_pad = _round_up(DHW, CHE)
        self._NCH = self._DHW_pad // CHE

        # Per-step one-hot intermediate budget: (TU, V, CHE) f32.
        budget_bytes = 4 * 1024 * 1024
        TU = U
        if TU * V * CHE * 4 > budget_bytes and U % 8 == 0:
            TU = 8
            while U % (TU * 2) == 0 and (TU * 2) * V * CHE * 4 <= budget_bytes:
                TU *= 2
        self._TU = TU
        self._n_tiles = U // TU

    @staticmethod
    def create_rotation(theta):
        tx, ty, tz = theta[:, 0], theta[:, 1], theta[:, 2]
        cx, sx = jnp.cos(tx), jnp.sin(tx)
        cy, sy = jnp.cos(ty), jnp.sin(ty)
        cz, sz = jnp.cos(tz), jnp.sin(tz)
        z = jnp.zeros_like(tx)
        o = jnp.ones_like(tx)
        Rx = jnp.stack([jnp.stack([o, z, z], -1),
                        jnp.stack([z, cx, -sx], -1),
                        jnp.stack([z, sx, cx], -1)], -2)
        Ry = jnp.stack([jnp.stack([cy, z, sy], -1),
                        jnp.stack([z, o, z], -1),
                        jnp.stack([-sy, z, cy], -1)], -2)
        Rz = jnp.stack([jnp.stack([cz, -sz, z], -1),
                        jnp.stack([sz, cz, z], -1),
                        jnp.stack([z, z, o], -1)], -2)
        return Rx @ Ry @ Rz

    def _geometry(self, volume, transform_param):
        dtype = volume.dtype
        B = volume.shape[0]
        if transform_param is None:
            transform_param = jnp.zeros((B, 6), dtype)
        if transform_param.ndim == 2:
            R = self.create_rotation(transform_param[:, :3])
            t = -transform_param[:, 3:]
        else:
            R = transform_param[:, :3, :3]
            t = -transform_param[:, :3, 3]
        t = t.at[:, 2].add(self.isocenter_distance)
        t = t[..., None]                                              # (B, 3, 1)

        R_T = jnp.swapaxes(R, 1, 2)
        Vinv = jnp.asarray(self.voxel_size_inv, dtype)
        Kinv = jnp.asarray(self.K_inv, dtype)
        ray_mat = jnp.einsum('ij,bjk,kl->bil', Vinv, R_T, Kinv)       # (B, 3, 3)
        src = (jnp.asarray(self.volume_offset, dtype)
               - jnp.einsum('ij,bjk->bik', Vinv,
                            jnp.einsum('bij,bjk->bik', R_T, t))[..., 0])   # (B, 3)
        return ray_mat, src

    def _pixel_steps(self, ray_mat):
        dtype = ray_mat.dtype
        U, V = self.detector_shape
        u = jnp.broadcast_to(jnp.arange(U, dtype=dtype)[:, None], (U, V))
        v = jnp.broadcast_to(jnp.arange(V, dtype=dtype)[None, :], (U, V))
        pix = jnp.stack([u, v, jnp.ones((U, V), dtype)], axis=-1)     # (U, V, 3)
        d = jnp.einsum('bij,uvj->buvi', ray_mat, pix)                 # (B, U, V, 3)
        vs = jnp.asarray(self.voxel_size, dtype)
        inv_norm = lax.rsqrt(jnp.sum((d * vs) ** 2, axis=-1, keepdims=True))
        step_vec = d * inv_norm * self.step_size                      # (B, U, V, 3)
        return jnp.transpose(step_vec, (0, 3, 1, 2))                  # (B, 3, U, V)

    def __call__(self, volume, transform_param=None):
        volume = jnp.asarray(volume, jnp.float32)
        B, C = volume.shape[0], volume.shape[1]
        assert tuple(volume.shape[2:]) == self.volume_shape, \
            'Input data shape does not match volume shape.'
        D, H, W = self.volume_shape
        U, V = self.detector_shape
        TU, n_tiles = self._TU, self._n_tiles
        CHE, NCH, DHW_pad = self._CHE, self._NCH, self._DHW_pad
        n_steps = self.n_steps

        ray_mat, source = self._geometry(volume, transform_param)
        steps_in = self._pixel_steps(ray_mat).astype(jnp.float32)              # (B,3,U,V)
        starts_in = jnp.broadcast_to(source[:, :, None, None],
                                     (B, 3, U, V)).astype(jnp.float32)

        kmin, kmax = _k_ranges(steps_in, starts_in, n_steps, (D, H, W),
                               TU, CHE, NCH)

        DHW = D * H * W
        vol_flat = volume.reshape(B, C, DHW)
        if DHW_pad > DHW:
            vol_flat = jnp.pad(vol_flat, ((0, 0), (0, 0), (0, DHW_pad - DHW)))
        vol_in = vol_flat.reshape(B, C, NCH, 1, CHE)

        kern = functools.partial(
            _drr_nearest_kernel,
            vol_shape=(D, H, W),
            chunk_elems=CHE,
            n_chunks=NCH,
            n_tiles=n_tiles,
            out_scale=self.step_size / 10.0,     # folds the module's /10.0
        )

        grid_spec = pltpu.PrefetchScalarGridSpec(
            num_scalar_prefetch=2,
            grid=(B, C, n_tiles, NCH),
            in_specs=[
                pl.BlockSpec((1, 3, TU, V), lambda b, c, t, ch, *_: (b, 0, t, 0)),
                pl.BlockSpec((1, 3, TU, V), lambda b, c, t, ch, *_: (b, 0, t, 0)),
                pl.BlockSpec((1, 1, 1, 1, CHE),
                             lambda b, c, t, ch, *_: (b, c, ch, 0, 0)),
            ],
            out_specs=pl.BlockSpec((1, 1, TU, V),
                                   lambda b, c, t, ch, *_: (b, c, t, 0)),
        )

        projection = pl.pallas_call(
            kern,
            out_shape=jax.ShapeDtypeStruct((B, C, U, V), jnp.float32),
            grid_spec=grid_spec,
            compiler_params=pltpu.CompilerParams(
                dimension_semantics=("parallel", "parallel", "parallel", "arbitrary"),
                vmem_limit_bytes=32 * 1024 * 1024,
            ),
        )(kmin, kmax, steps_in, starts_in, vol_in)

        return projection, (steps_in, starts_in, n_steps)


# ----------------------------------------------------------------------------
# Pure-JAX reference (same marching math, plain gather) for validation
# ----------------------------------------------------------------------------
def _reference_march(volume, steps, starts, n_steps, step_size):
    B, C, D, H, W = volume.shape
    k = jnp.arange(n_steps, dtype=jnp.float32)

    def one(vol_c, st, p0):
        pts = p0[:, :, :, None] + st[:, :, :, None] * k               # (3, U, V, K)
        idx = jnp.floor(pts + 0.5).astype(jnp.int32)
        ix, iy, iz = idx[0], idx[1], idx[2]
        inb = ((ix >= 0) & (ix < D) & (iy >= 0) & (iy < H) &
               (iz >= 0) & (iz < W))
        vals = vol_c[:, jnp.clip(ix, 0, D - 1),
                     jnp.clip(iy, 0, H - 1),
                     jnp.clip(iz, 0, W - 1)]                           # (C, U, V, K)
        vals = jnp.where(inb[None], vals, 0.0)
        return vals.sum(-1) * step_size

    return jax.vmap(one)(volume, steps, starts) / 10.0


if __name__ == "__main__":
    key = jax.random.PRNGKey(0)
    k1, k2 = jax.random.split(key)

    B, C = 2, 1
    vol_shape = (16, 16, 16)
    det_shape = (16, 16)

    volume = jax.random.uniform(k1, (B, C) + vol_shape, jnp.float32)
    transform_param = 0.1 * jax.random.normal(k2, (B, 6), jnp.float32)

    projector = DRRAverageProjectorPallas(
        volume_shape=vol_shape,
        detector_shape=det_shape,
        voxel_size=(1.0, 1.0, 1.0),
        pixel_size=(2.0, 2.0),
        step_size=1.0,
        source_to_detector_distance=60.0,
        isocenter_distance=30.0,
        interp='nearest',
        max_abs_translation=2.0,
    )

    out, (steps_in, starts_in, n_steps) = projector(volume, transform_param)
    out = jax.block_until_ready(out)

    ref = _reference_march(volume, steps_in, starts_in, n_steps, projector.step_size)
    ref = jax.block_until_ready(ref)

    np.testing.assert_allclose(np.asarray(out), np.asarray(ref), rtol=1e-4, atol=1e-4)
    assert out.shape == (B, C) + det_shape
    print("KERNEL_OK")
</pallas_src>

<mosaic_0001>
module attributes {stable_mosaic.version = 11 : i64} {
  func.func @_drr_nearest_kernel(%arg0: i32, %arg1: i32, %arg2: i32, %arg3: i32, %arg4: memref<8xi32, #tpu.memory_space<smem>>, %arg5: memref<8xi32, #tpu.memory_space<smem>>, %arg6: memref<1x3x16x16xf32, #tpu.memory_space<vmem>>, %arg7: memref<1x3x16x16xf32, #tpu.memory_space<vmem>>, %arg8: memref<1x1x1x1x1024xf32, #tpu.memory_space<vmem>>, %arg9: memref<1x1x16x16xf32, #tpu.memory_space<vmem>>) attributes {dimension_semantics = [#tpu.dimension_semantics<parallel>, #tpu.dimension_semantics<parallel>, #tpu.dimension_semantics<parallel>, #tpu.dimension_semantics<arbitrary>], iteration_bounds = array<i64: 2, 1, 1, 4>, scalar_prefetch = 2 : i64, scratch_operands = 0 : i64, tpu.core_type = #tpu.core_type<tc>, window_params = [{transform_indices = @transform_0, window_bounds = array<i64: 1, 3, 16, 16>}, {transform_indices = @transform_1, window_bounds = array<i64: 1, 3, 16, 16>}, {transform_indices = @transform_2, window_bounds = array<i64: 1, 1, 1, 1, 1024>}, {transform_indices = @transform_3, window_bounds = array<i64: 1, 1, 16, 16>}]} {
    %c0_i32 = arith.constant 0 : i32
    %0 = arith.cmpi eq, %arg3, %c0_i32 : i32
    %1 = arith.extui %0 : i1 to i32
    %c0_i32_0 = arith.constant 0 : i32
    %2 = arith.cmpi ne, %1, %c0_i32_0 : i32
    scf.if %2 {
      %cst_37 = arith.constant 0.000000e+00 : f32
      %41 = vector.broadcast %cst_37 : f32 to vector<1x1x16x16xf32>
      %c0_38 = arith.constant 0 : index
      %c0_39 = arith.constant 0 : index
      %c0_40 = arith.constant 0 : index
      %c0_41 = arith.constant 0 : index
      %42 = vector.load %arg9[%c0_38, %c0_39, %c0_40, %c0_41] : memref<1x1x16x16xf32, #tpu.memory_space<vmem>>, vector<1x1x16x16xf32>
      tpu.vector_store %arg9[%c0_38, %c0_39, %c0_40, %c0_41], %41 {strides = array<i32>} : memref<1x1x16x16xf32, #tpu.memory_space<vmem>>, vector<1x1x16x16xf32>,
    } else {
    }
    %c1_i32 = arith.constant 1 : i32
    %3 = arith.muli %arg0, %c1_i32 : i32
    %4 = arith.addi %3, %arg2 : i32
    %c4_i32 = arith.constant 4 : i32
    %5 = arith.muli %4, %c4_i32 : i32
    %6 = arith.addi %5, %arg3 : i32
    %7 = arith.index_cast %6 : i32 to index
    %8 = memref.load %arg4[%7] : memref<8xi32, #tpu.memory_space<smem>>
    %9 = arith.index_cast %6 : i32 to index
    %10 = memref.load %arg5[%9] : memref<8xi32, #tpu.memory_space<smem>>
    %c0 = arith.constant 0 : index
    %c0_1 = arith.constant 0 : index
    %c0_2 = arith.constant 0 : index
    %c0_3 = arith.constant 0 : index
    %11 = vector.load %arg6[%c0, %c0_1, %c0_2, %c0_3] : memref<1x3x16x16xf32, #tpu.memory_space<vmem>>, vector<1x1x16x16xf32>
    %12 = vector.shape_cast %11 : vector<1x1x16x16xf32> to vector<16x16xf32>
    %c0_4 = arith.constant 0 : index
    %c1 = arith.constant 1 : index
    %c0_5 = arith.constant 0 : index
    %c0_6 = arith.constant 0 : index
    %13 = vector.load %arg6[%c0_4, %c1, %c0_5, %c0_6] : memref<1x3x16x16xf32, #tpu.memory_space<vmem>>, vector<1x1x16x16xf32>
    %14 = vector.shape_cast %13 : vector<1x1x16x16xf32> to vector<16x16xf32>
    %c0_7 = arith.constant 0 : index
    %c2 = arith.constant 2 : index
    %c0_8 = arith.constant 0 : index
    %c0_9 = arith.constant 0 : index
    %15 = vector.load %arg6[%c0_7, %c2, %c0_8, %c0_9] : memref<1x3x16x16xf32, #tpu.memory_space<vmem>>, vector<1x1x16x16xf32>
    %16 = vector.shape_cast %15 : vector<1x1x16x16xf32> to vector<16x16xf32>
    %c0_10 = arith.constant 0 : index
    %c0_11 = arith.constant 0 : index
    %c0_12 = arith.constant 0 : index
    %c0_13 = arith.constant 0 : index
    %17 = vector.load %arg7[%c0_10, %c0_11, %c0_12, %c0_13] : memref<1x3x16x16xf32, #tpu.memory_space<vmem>>, vector<1x1x16x16xf32>
    %18 = vector.shape_cast %17 : vector<1x1x16x16xf32> to vector<16x16xf32>
    %c0_14 = arith.constant 0 : index
    %c1_15 = arith.constant 1 : index
    %c0_16 = arith.constant 0 : index
    %c0_17 = arith.constant 0 : index
    %19 = vector.load %arg7[%c0_14, %c1_15, %c0_16, %c0_17] : memref<1x3x16x16xf32, #tpu.memory_space<vmem>>, vector<1x1x16x16xf32>
    %20 = vector.shape_cast %19 : vector<1x1x16x16xf32> to vector<16x16xf32>
    %c0_18 = arith.constant 0 : index
    %c2_19 = arith.constant 2 : index
    %c0_20 = arith.constant 0 : index
    %c0_21 = arith.constant 0 : index
    %21 = vector.load %arg7[%c0_18, %c2_19, %c0_20, %c0_21] : memref<1x3x16x16xf32, #tpu.memory_space<vmem>>, vector<1x1x16x16xf32>
    %22 = vector.shape_cast %21 : vector<1x1x16x16xf32> to vector<16x16xf32>
    %c0_22 = arith.constant 0 : index
    %c0_23 = arith.constant 0 : index
    %c0_24 = arith.constant 0 : index
    %c0_25 = arith.constant 0 : index
    %c0_26 = arith.constant 0 : index
    %23 = vector.load %arg8[%c0_22, %c0_23, %c0_24, %c0_25, %c0_26] : memref<1x1x1x1x1024xf32, #tpu.memory_space<vmem>>, vector<1x1x1x1x1024xf32>
    %24 = vector.shape_cast %23 : vector<1x1x1x1x1024xf32> to vector<1x1024xf32>
    %25 = vector.shape_cast %24 : vector<1x1024xf32> to vector<1x1x1024xf32>
    %26 = tpu.iota {dimensions = array<i32: 2>} : vector<1x1x1024xi32>
    %c1024_i32 = arith.constant 1024 : i32
    %27 = arith.muli %arg3, %c1024_i32 : i32
    %cst = arith.constant 0.000000e+00 : f32
    %28 = vector.broadcast %cst : f32 to vector<16x16xf32>
    %29 = arith.subi %10, %8 : i32
    %30 = arith.addi %8, %29 : i32
    %c1_i32_27 = arith.constant 1 : i32
    %31 = scf.for %arg10 = %8 to %30 step %c1_i32_27 iter_args(%arg11 = %28) -> (vector<16x16xf32>)  : i32 {
      %41 = arith.sitofp %arg10 : i32 to f32
      %42 = vector.broadcast %41 : f32 to vector<16x16xf32>
      %43 = arith.mulf %12, %42 : vector<16x16xf32>
      %44 = arith.addf %18, %43 : vector<16x16xf32>
      %cst_37 = arith.constant 5.000000e-01 : f32
      %45 = vector.broadcast %cst_37 : f32 to vector<16x16xf32>
      %46 = arith.addf %44, %45 : vector<16x16xf32>
      %47 = math.floor %46 : vector<16x16xf32>
      %48 = arith.fptosi %47 : vector<16x16xf32> to vector<16x16xi32>
      %49 = vector.broadcast %41 : f32 to vector<16x16xf32>
      %50 = arith.mulf %14, %49 : vector<16x16xf32>
      %51 = arith.addf %20, %50 : vector<16x16xf32>
      %cst_38 = arith.constant 5.000000e-01 : f32
      %52 = vector.broadcast %cst_38 : f32 to vector<16x16xf32>
      %53 = arith.addf %51, %52 : vector<16x16xf32>
      %54 = math.floor %53 : vector<16x16xf32>
      %55 = arith.fptosi %54 : vector<16x16xf32> to vector<16x16xi32>
      %56 = vector.broadcast %41 : f32 to vector<16x16xf32>
      %57 = arith.mulf %16, %56 : vector<16x16xf32>
      %58 = arith.addf %22, %57 : vector<16x16xf32>
      %cst_39 = arith.constant 5.000000e-01 : f32
      %59 = vector.broadcast %cst_39 : f32 to vector<16x16xf32>
      %60 = arith.addf %58, %59 : vector<16x16xf32>
      %61 = math.floor %60 : vector<16x16xf32>
      %62 = arith.fptosi %61 : vector<16x16xf32> to vector<16x16xi32>
      %c0_i32_40 = arith.constant 0 : i32
      %63 = vector.broadcast %c0_i32_40 : i32 to vector<16x16xi32>
      %64 = arith.cmpi sge, %48, %63 : vector<16x16xi32>
      %c16_i32 = arith.constant 16 : i32
      %65 = vector.broadcast %c16_i32 : i32 to vector<16x16xi32>
      %66 = arith.cmpi slt, %48, %65 : vector<16x16xi32>
      %67 = arith.andi %64, %66 : vector<16x16xi1>
      %c0_i32_41 = arith.constant 0 : i32
      %68 = vector.broadcast %c0_i32_41 : i32 to vector<16x16xi32>
      %69 = arith.cmpi sge, %55, %68 : vector<16x16xi32>
      %70 = arith.andi %67, %69 : vector<16x16xi1>
      %c16_i32_42 = arith.constant 16 : i32
      %71 = vector.broadcast %c16_i32_42 : i32 to vector<16x16xi32>
      %72 = arith.cmpi slt, %55, %71 : vector<16x16xi32>
      %73 = arith.andi %70, %72 : vector<16x16xi1>
      %c0_i32_43 = arith.constant 0 : i32
      %74 = vector.broadcast %c0_i32_43 : i32 to vector<16x16xi32>
      %75 = arith.cmpi sge, %62, %74 : vector<16x16xi32>
      %76 = arith.andi %73, %75 : vector<16x16xi1>
      %c16_i32_44 = arith.constant 16 : i32
      %77 = vector.broadcast %c16_i32_44 : i32 to vector<16x16xi32>
      %78 = arith.cmpi slt, %62, %77 : vector<16x16xi32>
      %79 = arith.andi %76, %78 : vector<16x16xi1>
      %c16_i32_45 = arith.constant 16 : i32
      %80 = vector.broadcast %c16_i32_45 : i32 to vector<16x16xi32>
      %81 = arith.muli %48, %80 : vector<16x16xi32>
      %82 = arith.addi %81, %55 : vector<16x16xi32>
      %c16_i32_46 = arith.constant 16 : i32
      %83 = vector.broadcast %c16_i32_46 : i32 to vector<16x16xi32>
      %84 = arith.muli %82, %83 : vector<16x16xi32>
      %85 = arith.addi %84, %62 : vector<16x16xi32>
      %86 = vector.broadcast %27 : i32 to vector<16x16xi32>
      %87 = arith.subi %85, %86 : vector<16x16xi32>
      %c-1_i32 = arith.constant -1 : i32
      %88 = vector.broadcast %c-1_i32 : i32 to vector<16x16xi32>
      %89 = arith.select %79, %87, %88 : vector<16x16xi1>, vector<16x16xi32>
      %90 = vector.shape_cast %89 : vector<16x16xi32> to vector<16x16x1xi32>
      %91 = vector.broadcast %90 : vector<16x16x1xi32> to vector<16x16x1024xi32>
      %92 = vector.broadcast %26 : vector<1x1x1024xi32> to vector<16x16x1024xi32>
      %93 = arith.cmpi eq, %91, %92 : vector<16x16x1024xi32>
      %cst_47 = arith.constant 0.000000e+00 : f32
      %94 = vector.shape_cast %25 : vector<1x1x1024xf32> to vector<1x1x1024xf32>
      %95 = vector.broadcast %94 : vector<1x1x1024xf32> to vector<16x16x1024xf32>
      %96 = vector.broadcast %cst_47 : f32 to vector<16x16x1024xf32>
      %97 = arith.select %93, %95, %96 : vector<16x16x1024xi1>, vector<16x16x1024xf32>
      %cst_48 = arith.constant dense<0.000000e+00> : vector<16x16xf32>
      %98 = vector.multi_reduction <add>, %97, %cst_48 [2] : vector<16x16x1024xf32> to vector<16x16xf32>
      %99 = arith.addf %arg11, %98 : vector<16x16xf32>
      scf.yield %99 : vector<16x16xf32>
    }
    %c0_28 = arith.constant 0 : index
    %c0_29 = arith.constant 0 : index
    %c0_30 = arith.constant 0 : index
    %c0_31 = arith.constant 0 : index
    %32 = vector.load %arg9[%c0_28, %c0_29, %c0_30, %c0_31] : memref<1x1x16x16xf32, #tpu.memory_space<vmem>>, vector<1x1x16x16xf32>
    %33 = vector.shape_cast %32 : vector<1x1x16x16xf32> to vector<16x16xf32>
    %34 = arith.addf %33, %31 : vector<16x16xf32>
    %c0_32 = arith.constant 0 : index
    %c0_33 = arith.constant 0 : index
    %c0_34 = arith.constant 0 : index
    %c0_35 = arith.constant 0 : index
    %35 = vector.load %arg9[%c0_32, %c0_33, %c0_34, %c0_35] : memref<1x1x16x16xf32, #tpu.memory_space<vmem>>, vector<1x1x16x16xf32>
    %36 = vector.shape_cast %35 : vector<1x1x16x16xf32> to vector<16x16xf32>
    %37 = vector.shape_cast %34 : vector<16x16xf32> to vector<1x1x16x16xf32>
    tpu.vector_store %arg9[%c0_32, %c0_33, %c0_34, %c0_35], %37 {strides = array<i32>} : memref<1x1x16x16xf32, #tpu.memory_space<vmem>>, vector<1x1x16x16xf32>,
    %c3_i32 = arith.constant 3 : i32
    %38 = arith.cmpi eq, %arg3, %c3_i32 : i32
    %39 = arith.extui %38 : i1 to i32
    %c0_i32_36 = arith.constant 0 : i32
    %40 = arith.cmpi ne, %39, %c0_i32_36 : i32
    scf.if %40 {
      %c0_37 = arith.constant 0 : index
      %c0_38 = arith.constant 0 : index
      %c0_39 = arith.constant 0 : index
      %c0_40 = arith.constant 0 : index
      %41 = vector.load %arg9[%c0_37, %c0_38, %c0_39, %c0_40] : memref<1x1x16x16xf32, #tpu.memory_space<vmem>>, vector<1x1x16x16xf32>
      %cst_41 = arith.constant 1.000000e-01 : f32
      %42 = vector.broadcast %cst_41 : f32 to vector<1x1x16x16xf32>
      %43 = arith.mulf %41, %42 : vector<1x1x16x16xf32>
      %c0_42 = arith.constant 0 : index
      %c0_43 = arith.constant 0 : index
      %c0_44 = arith.constant 0 : index
      %c0_45 = arith.constant 0 : index
      %44 = vector.load %arg9[%c0_42, %c0_43, %c0_44, %c0_45] : memref<1x1x16x16xf32, #tpu.memory_space<vmem>>, vector<1x1x16x16xf32>
      tpu.vector_store %arg9[%c0_42, %c0_43, %c0_44, %c0_45], %43 {strides = array<i32>} : memref<1x1x16x16xf32, #tpu.memory_space<vmem>>, vector<1x1x16x16xf32>,
    } else {
    }
    return
  }
  func.func @transform_0(%arg0: i32, %arg1: i32, %arg2: i32, %arg3: i32, %arg4: memref<8xi32, #tpu.memory_space<smem>>, %arg5: memref<8xi32, #tpu.memory_space<smem>>) -> (i32, i32, i32, i32) {
    %c0_i32 = arith.constant 0 : i32
    %c0_i32_0 = arith.constant 0 : i32
    %c0_i32_1 = arith.constant 0 : i32
    return %arg0, %c0_i32, %arg2, %c0_i32_0 : i32, i32, i32, i32
  }
  func.func @transform_1(%arg0: i32, %arg1: i32, %arg2: i32, %arg3: i32, %arg4: memref<8xi32, #tpu.memory_space<smem>>, %arg5: memref<8xi32, #tpu.memory_space<smem>>) -> (i32, i32, i32, i32) {
    %c0_i32 = arith.constant 0 : i32
    %c0_i32_0 = arith.constant 0 : i32
    %c0_i32_1 = arith.constant 0 : i32
    return %arg0, %c0_i32, %arg2, %c0_i32_0 : i32, i32, i32, i32
  }
  func.func @transform_2(%arg0: i32, %arg1: i32, %arg2: i32, %arg3: i32, %arg4: memref<8xi32, #tpu.memory_space<smem>>, %arg5: memref<8xi32, #tpu.memory_space<smem>>) -> (i32, i32, i32, i32, i32) {
    %c0_i32 = arith.constant 0 : i32
    %c0_i32_0 = arith.constant 0 : i32
    %c0_i32_1 = arith.constant 0 : i32
    return %arg0, %arg1, %arg3, %c0_i32, %c0_i32_0 : i32, i32, i32, i32, i32
  }
  func.func @transform_3(%arg0: i32, %arg1: i32, %arg2: i32, %arg3: i32, %arg4: memref<8xi32, #tpu.memory_space<smem>>, %arg5: memref<8xi32, #tpu.memory_space<smem>>) -> (i32, i32, i32, i32) {
    %c0_i32 = arith.constant 0 : i32
    %c0_i32_0 = arith.constant 0 : i32
    return %arg0, %arg1, %arg2, %c0_i32 : i32, i32, i32, i32
  }
}

</mosaic_0001>

<bundles_post_ra>
// kernel: tpu_custom_call.1
= control target key start
LH: loop header
LB: loop body
LE: loop exit
PB: predicated region body
PF: predicated region fallthrough
CT: control target
= control target key end

     0   :  { %s3397_s24 = smov [#allocation3]   ;;  %s3398_s25 = smov [#allocation4]   ;;  %s5471_s0 = inlined_call_operand.hbm [shape: s32[8], index: 0, kind: input, shape index: {}]   ;;  %s5472_s2 = inlined_call_operand.hbm [shape: f32[2,3,16,16], index: 2, kind: input, shape index: {}]   ;;  %s5473_s3 = inlined_call_operand.hbm [shape: f32[2,3,16,16], index: 3, kind: input, shape index: {}]   ;;  %s5474_s4 = inlined_call_operand.hbm [shape: f32[2,1,4,1,1024], index: 4, kind: input, shape index: {}]   ;;  %s5475_s5 = inlined_call_operand.hbm [shape: f32[2,1,16,16], index: 5, kind: output, shape index: {}]   ;;  %s5476_s1 = inlined_call_operand.hbm [shape: s32[8], index: 1, kind: input, shape index: {}]  }
   0x1   :  { %5498 = sst [smem:[#allocation69_spill]] %s5472_s2  ;;  %s11_s20 = sshll.u32 %s5471_s0, 4  ;;  %s12_s20 = int_to_ptr.hbm [resolvable:$true] %s11_s20 }
   0x2   :  { %5499 = sst [smem:[#allocation70_spill]] %s5473_s3  ;;  %s16_s23 = sshll.u32 %s5476_s1, 4  ;;  %s17_s23 = int_to_ptr.hbm [resolvable:$true] %s16_s23 }
   0x3   :  { %5500 = sst [smem:[#allocation71_spill]] %s5475_s5 }
   0x4   :  { %14 = dma.hbm_to_smem %s12_s20, 16, %s3397_s24, [#allocation2] }
   0x5   :  { %19 = dma.hbm_to_smem %s17_s23, 16, %s3398_s25, [#allocation2] }
   0x6   :  { %3075 = dma.done.wait [#allocation2], 32 }
   0x7   :  { %3076 = vsyncadd [#allocation2], 4294967264 }
   0x8   :  { %22 = sfence }
   0x9   :  { %23 = vsyncpa [#allocation6], 0 }
   0xa   :  { %25 = vsyncpa [#allocation6 + $0x1], 0 }
   0xb   :  { %26 = vsyncpa [#allocation9], 0 }
   0xc   :  { %28 = vsyncpa [#allocation9 + $0x1], 0 }
   0xd   :  { %29 = vsyncpa [#allocation7], 0 }
   0xe   :  { %31 = vsyncpa [#allocation7 + $0x1], 0  ;;  %s3440_s0 = smov 0   ;;  %s3442_s26 = smov 0  }
   0xf   :  { %s3444_s1 = smov 0   ;;  %s3446_s27 = smov 0  }
  0x10   :  { %s3448_s28 = smov 0   ;;  %s3450_s29 = smov 0  }
  0x11   :  { %s3452_s30 = smov 0   ;;  %s3454_s6 = smov 0  }
  0x12   :  { %s3456_s7 = smov 0   ;;  %s3458_s8 = smov 0  }
  0x13   :  { %s3460_s9 = smov 0  }
  0x14 LB: > { %5501 = sst [smem:[#allocation17_spill]] %s3107_s27  ;;  %s1926_s10 = sadd.s32 4294967294, %s3135_s9   ;;  %s3135_s9 = sphi %s3460_s9, %s37_s9   ;;  %s3131_s8 = sphi %s3458_s8, %s5723_s8   ;;  %s3127_s7 = sphi %s3456_s7, %s5722_s7   ;;  %s3123_s6 = sphi %s3454_s6, %s5721_s6   ;;  %s3119_s30 = sphi %s3452_s30, %s5720_s30   ;;  %s3115_s29 = sphi %s3450_s29, %s5719_s29   ;;  %s3111_s28 = sphi %s3448_s28, %s5718_s28   ;;  %s3107_s27 = sphi %s3446_s27, %s5717_s27   ;;  %s3103_s1 = sphi %s3444_s1, %s5716_s1   ;;  %s3099_s26 = sphi %s3442_s26, %s5715_s26   ;;  %s3095_s0 = sphi %s3440_s0, %s5714_s0  }
  0x15   : > { %5502 = sst [smem:[#allocation18_spill]] %s3119_s30  ;;  %p79_p0 = scmp.ne.s32.totalorder %s3115_s29, %s3111_s28 }
  0x16   : > { %5503 = sst [smem:[#allocation19_spill]] %s3123_s6  ;;  %p80_p1 = scmp.eq.s32.totalorder %s3135_s9, 0 }
  0x17   : > { %p85_p2 = scmp.ne.s32.totalorder %s3111_s28, %s3107_s27  ;;  %p177_p3 = scmp.eq.s32.totalorder %s1926_s10, 7 }
  0x18   : > { %p81_p4 = por %p80_p1, %p79_p0  ;;  %p1994_p6 = scmp.lt.s32.totalorder %s3135_s9, 8 }
  0x19   : > { %p3510_p5 = por %p177_p3, %p85_p2  ;;  %s197_s13 = sand.u32 1, %s3115_s29  }
  0x1a   : > { %s1956_s14 = smul.u32 48, %s3131_s8  ;;  %p3519_p7 = pnand %p1994_p6, %p81_p4 }
  0x1b   : > { %s5504_s12 = scalar_select %p3510_p5, 1, 0 }
  0x1c   : > { %s1955_s15 = smul.u32 48, %s197_s13  ;;  %s221_s17 = sand.u32 1, %s3135_s9  }
  0x1d   : > { %5505 = sst [smem:[#allocation20_spill]] %s5504_s12  ;;  %p1934_p8 = scmp.ge.s32.totalorder %s3135_s9, 1 }
  0x1e   : > { %s5507_s3 = sld [smem:[#allocation70_spill]]  ;;  %s225_s21 = scalar_lea.vmem [#allocation8], %s1955_s15 }
  0x1f   : > { %s235_s22 = sshll.u32 %s225_s21, 4  ;;  %s3528_s24 = scalar_lea.sflag [#allocation9], %s221_s17  ;;  %s236_s22 = int_to_ptr.vmem [resolvable:$true] %s235_s22 }
  0x20   : > { %s3399_s25 = smov 128   ;;  %s3400_s10 = smov 8  }
  0x21   : > { %p266_p9 = scmp.lt.s32.totalorder %s3135_s9, 9  ;;  %s5509_s2 = sld [smem:[#allocation69_spill]] }
  0x22   : > { %s201_s17 = scalar_lea.vmem [#allocation5], %s1955_s15  ;;  %s63_s15 = sadd.s32 1, %s3131_s8 }
  0x23   : > { %p3534_p10 = pnand %p1934_p8, %p266_p9  ;;  %s211_s11 = sshll.u32 %s201_s17, 4  ;;  %s212_s11 = int_to_ptr.vmem [resolvable:$true] %s211_s11 }
  0x24   : > { %s232_s20 = scalar_lea.hbm %s5507_s3, %s1956_s14  ;;  %s130_s19 = sadd.s32 1, %s3103_s1 }
  0x25   : > { %s233_s23 = sshll.u32 %s232_s20, 4  ;;  %p137_p13 = scmp.ne.s32.totalorder %s3103_s1, %s3099_s26  ;;  %s234_s23 = int_to_ptr.hbm [resolvable:$true] %s233_s23 }
  0x26   : > { %1986 = dma.hbm_to_vmem [thread:$0]  (!%p3519_p7), %s234_s23, 768, %s236_s22, %s3528_s24, %s3399_s25, %s3399_s25, %s3400_s10  }
  0x27   : > { %s208_s21 = scalar_lea.hbm %s5509_s2, %s1956_s14  ;;  %s198_s22 = scalar_lea.sflag [#allocation6], %s197_s13 }
  0x28   : > { %s209_s3 = sshll.u32 %s208_s21, 4  ;;  %s3544_s23 = sadd.s32 4294967295, %s3135_s9   ;;  %s210_s3 = int_to_ptr.hbm [resolvable:$true] %s209_s3 }
  0x29   : > { %1983 = dma.hbm_to_vmem [thread:$0]  (!%p3519_p7), %s210_s3, 768, %s212_s11, %s198_s22, %s3399_s25, %s3399_s25, %s3400_s10  }
  0x2a   : > { %s52_s14 = sadd.s32 1, %s3127_s7  ;;  %p86_p12 = scmp.eq.s32.totalorder %s3544_s23, 0 }
  0x2b   : > { %p53_p11 = scmp.ge.s32.totalorder %s52_s14, 4  ;;  %p3566_p7 = por %p137_p13, %p80_p1 }
  0x2c   : > { %p3558_p3 = por %p86_p12, %p85_p2  ;;  %p143_p8 = scmp.ne.s32.totalorder %s3099_s26, %s3095_s0 }
  0x2d   : > { %s5725_s14 = smov (%p53_p11, %s52_s14), 0  ;;  %s5727_s15 = smov (!%p53_p11, %s63_s15), %s3131_s8 }
  0x2e   : > { %5510 = sst [smem:[#allocation21_spill]] %s5725_s14  ;;  %s126_s11 = ssub.s32 %s3127_s7, %s5725_s14 }
  0x2f   : > { %p65_p4 = scmp.ge.s32.totalorder %s5727_s15, 2  ;;  %p171_p9 = scmp.eq.s32.totalorder %s3544_s23, 7 }
  0x30   : > { %p3575_p11 = por %p143_p8, %p86_p12  ;;  %s247_s20 = sand.u32 1, %s3103_s1  }
  0x31   : > { %s5729_s15 = smov (%p65_p4, %s5727_s15), 0  ;;  %p3582_p2 = por %p171_p9, %p79_p0 }
  0x32   : > { %5513 = sst [smem:[#allocation22_spill]] %s5729_s15  ;;  %s67_s10 = ssub.s32 %s3131_s8, %s5729_s15 }
  0x33   : > { %s5515_s25 = scalar_select %p3582_p2, 1, 0 }
  0x34   : > { %p70_p1 = scmp.eq.s32.totalorder %s67_s10, 0  ;;  %s127_s0 = sor.u32 %s126_s11, %s67_s10 }
  0x35   : > { %5516 = sst [smem:[#allocation23_spill]] %s5515_s25  ;;  %p128_p13 = scmp.eq.s32.totalorder %s127_s0, 0 }
  0x36   : > { %s1931_s21 = sshll.u32 %s247_s20, 3  ;;  %s5517_s17 = sadd.s32 1, %s3115_s29 }
  0x37   : > { %s3592_s22 = scalar_select %p70_p1, %s3115_s29, %s5517_s17  }
  0x38   : > { %s3595_s2 = scalar_select %p128_p13, %s3103_s1, %s130_s19  }
  0x39   : > { %s1932_s14 = sshll.u32 %s3127_s7, 3  ;;  %s1933_s12 = sshll.u32 %s3131_s8, 5 }
  0x3a   : > { %s249_s27 = scalar_lea.vmem [#allocation10], %s1931_s21  ;;  %s256_s6 = sadd.s32 %s1933_s12, %s1932_s14 }
  0x3b   : > { %s261_s5 = sshll.u32 %s249_s27, 4  ;;  %s257_s15 = scalar_lea.hbm %s5474_s4, %s256_s6  ;;  %s262_s5 = int_to_ptr.vmem [resolvable:$true] %s261_s5 }
  0x3c   : > { %p1987_p0 = pnand %p1994_p6, %p3566_p7  ;;  %s259_s11 = sshll.u32 %s257_s15, 4  ;;  %s260_s11 = int_to_ptr.hbm [resolvable:$true] %s259_s11 }
  0x3d   : > { %270 = sbr.rel (%p3534_p10) target bundleno = 625 (0x271), region = 32 }
  0x3e   : > { %1989 = dma.hbm_to_vmem [thread:$0]  (!%p1987_p0), %s260_s11, 128, %s262_s5, %s3528_s24  }
  0x42   : > { %s3610_s19 = sand.u32 1, %s3111_s28  }
  0x43   : > { %s1959_s27 = smul.u32 48, %s3610_s19  ;;  %s273_s12 = scalar_lea.sflag [#allocation6], %s3610_s19 }
  0x45   : > { %s3614_s14 = scalar_lea.vmem [#allocation5], %s1959_s27 }
  0x46   : > { %3078 = dma.done.wait (%p3558_p3), %s273_s12, 768  }
  0x47   : > { %3080 = vsyncadd (%p3558_p3), %s273_s12, 4294966528  ;;  %s282_s5 = sand.u32 1, %s3544_s23   ;;  %s3621_s6 = scalar_lea.vmem [#allocation8], %s1959_s27 }
  0x48   : > { %s283_s30 = scalar_lea.sflag [#allocation9], %s282_s5 }
  0x49   : > { %3082 = dma.done.wait (%p3558_p3), %s283_s30, 768  }
  0x4a   : > { %3084 = vsyncadd (%p3558_p3), %s283_s30, 4294966528  ;;  %s294_s24 = sand.u32 1, %s3099_s26  }
  0x4b   : > { %s3628_s18 = sshll.u32 %s294_s24, 3 }
  0x4c   : > { %s296_s15 = scalar_lea.vmem [#allocation10], %s3628_s18 }
  0x4d   : > { %3086 = dma.done.wait (%p3575_p11), %s283_s30, 128  }
  0x4e   : > { %3088 = vsyncadd (%p3575_p11), %s283_s30, 4294967168  ;;  %s1936_s23 = sshll.u32 %s3610_s19, 4  ;;  %s5518_s25 = sld [smem:[#allocation18_spill]] }
  0x4f   : > { %s3636_s13 = scalar_lea.vmem [#allocation11], %s1936_s23 }
  0x54   : > { %p1937_p6 = scmp.ne.s32.totalorder %s5518_s25, 0 }
  0x56   : > { %336 = sbr.rel (%p1937_p6) target bundleno = 94 (0x5e), region = 48 }
  0x5b   : > { %vm337_vm0 = vcmask 130048   ;;  %v3401_v0 = vmov 0.0  }
  0x5c   : > { %338 = vst.msk [vmem:[%s3636_s13] sm:$0xff] %vm337_vm0, %v3401_v0 }
  0x5d   : > { %339 = vst.msk [vmem:[%s3636_s13 + $0x8] sm:$0xff] %vm337_vm0, %v3401_v0 }
  0x5e PF: > { %s5519_s3 = sld [smem:[#allocation19_spill]]  ;;  %v3643_v1 = vld [vmem:[%s3614_s14] sm:$0xff]  ;;  %v3646_v2 = vld [vmem:[%s3614_s14 + $0x8] sm:$0xff]  ;;  %v3649_v3 = vld [vmem:[%s3614_s14 + $0x10] sm:$0xff]  ;;  %v5485_v4 = vlaneseq  ;;  %v3714_v23 = vmov 0.0   ;;  %v3716_v24 = vmov 0.0  }
  0x5f   : > { %s5520_s16 = sld [smem:[#allocation18_spill]]  ;;  %5521 = vst [vmem:[#allocation24_spill] sm:$0xff] %v3643_v1  ;;  %v3654_v5 = vld [vmem:[%s3614_s14 + $0x18] sm:$0xff]  ;;  %v3657_v6 = vld [vmem:[%s3614_s14 + $0x20] sm:$0xff]  ;;  %v3660_v7 = vld [vmem:[%s3614_s14 + $0x28] sm:$0xff]  ;;  %v3718_v25 = vmov 0.0  }
  0x60   : > { %5522 = vst [vmem:[#allocation25_spill] sm:$0xff] %v3646_v2  ;;  %v3665_v8 = vld [vmem:[%s3621_s6] sm:$0xff]  ;;  %v3668_v9 = vld [vmem:[%s3621_s6 + $0x8] sm:$0xff]  ;;  %v3671_v10 = vld [vmem:[%s3621_s6 + $0x10] sm:$0xff]  ;;  %v3674_v11 = vand.u32 127, %v5485_v4  ;;  %v3720_v26 = vmov 0.0  }
  0x61   : > { %5523 = vst [vmem:[#allocation26_spill] sm:$0xff] %v3649_v3  ;;  %v3679_v12 = vld [vmem:[%s3621_s6 + $0x18] sm:$0xff]  ;;  %v3682_v13 = vld [vmem:[%s3621_s6 + $0x20] sm:$0xff]  ;;  %v3685_v14 = vld [vmem:[%s3621_s6 + $0x28] sm:$0xff]  ;;  %v3722_v27 = vmov 0.0   ;;  %v3724_v28 = vmov 0.0  }
  0x62   : > { %5524 = vst [vmem:[#allocation27_spill] sm:$0xff] %v3654_v5  ;;  %v3689_v15 = vld [vmem:[%s296_s15] sm:$0xff]  ;;  %v3692_v16 = vadd.s32 128, %v3674_v11  ;;  %v3695_v17 = vadd.s32 256, %v3674_v11  ;;  %v3698_v18 = vadd.s32 384, %v3674_v11  ;;  %v3701_v19 = vadd.s32 512, %v3674_v11 }
  0x63   : > { %5525 = vst [vmem:[#allocation28_spill] sm:$0xff] %v3657_v6  ;;  %v3704_v20 = vadd.s32 640, %v3674_v11  ;;  %v3707_v21 = vadd.s32 768, %v3674_v11  ;;  %v3710_v22 = vadd.s32 896, %v3674_v11  ;;  %v3726_v29 = vmov 0.0  }
  0x64   : > { %s1938_s10 = sshll.u32 %s5519_s3, 2  ;;  %5526 = vst [vmem:[#allocation29_spill] sm:$0xff] %v3660_v7  ;;  %v3728_v30 = vmov 0.0   ;;  %v3730_v31 = vmov 0.0   ;;  %v3732_v32 = vmov 0.0   ;;  %v3734_v33 = vmov 0.0  }
  0x65   : > { %s1947_s20 = sshll.u32 %s5520_s16, 10  ;;  %s342_s0 = sadd.s32 %s5520_s16, %s1938_s10  ;;  %5527 = vst [vmem:[#allocation30_spill] sm:$0xff] %v3665_v8  ;;  %v3736_v34 = vmov 0.0   ;;  %v3738_v35 = vmov 0.0   ;;  %v3740_v36 = vmov 0.0   ;;  %v3742_v37 = vmov 0.0  }
  0x66   : > { %s3662_s21 = sld [smem:[#allocation3 + %s342_s0]]   ;;  %5528 = vst [vmem:[#allocation31_spill] sm:$0xff] %v3668_v9  ;;  %v3744_v38 = vmov 0.0   ;;  %v3746_v39 = vmov 0.0   ;;  %v3748_v40 = vmov 0.0   ;;  %v3750_v41 = vmov 0.0  }
  0x67   : > { %5529 = vst [vmem:[#allocation32_spill] sm:$0xff] %v3671_v10  ;;  %s3676_s17 = sld [smem:[#allocation4 + %s342_s0]]  ;;  %v3752_v42 = vmov 0.0   ;;  %v3754_v43 = vmov 0.0   ;;  %v3756_v44 = vmov 0.0   ;;  %v3758_v45 = vmov 0.0  }
  0x68   : > { %5530 = vst [vmem:[#allocation33_spill] sm:$0xff] %v3674_v11  ;;  %v3760_v46 = vmov 0.0   ;;  %v3762_v47 = vmov 0.0   ;;  %v3764_v48 = vmov 0.0   ;;  %v3766_v49 = vmov 0.0  }
  0x69   : > { %5531 = vst [vmem:[#allocation34_spill] sm:$0xff] %v3679_v12  ;;  %v3768_v50 = vmov 0.0   ;;  %v3770_v51 = vmov 0.0   ;;  %v3772_v52 = vmov 0.0   ;;  %v3774_v53 = vmov 0.0  }
  0x6a   : > { %5532 = vst [vmem:[#allocation35_spill] sm:$0xff] %v3682_v13  ;;  %v3776_v54 = vmov 0.0  }
  0x6b   : > { %5533 = vst [vmem:[#allocation36_spill] sm:$0xff] %v3685_v14 }
  0x6c   : > { %5534 = vst [vmem:[#allocation37_spill] sm:$0xff] %v3689_v15 }
  0x6d   : > { %5535 = vst [vmem:[#allocation38_spill] sm:$0xff] %v3692_v16  ;;  %p1766_p10 = scmp.ge.s32.totalorder %s3662_s21, %s3676_s17 }
  0x6e   : > { %5536 = vst [vmem:[#allocation39_spill] sm:$0xff] %v3695_v17 }
  0x6f   : > { %5537 = vst [vmem:[#allocation40_spill] sm:$0xff] %v3698_v18  ;;  %1799 = sbr.rel (%p1766_p10) target bundleno = 568 (0x238), region = 114 }
  0x70   : > { %5538 = vst [vmem:[#allocation41_spill] sm:$0xff] %v3701_v19 }
  0x71   : > { %5539 = vst [vmem:[#allocation42_spill] sm:$0xff] %v3704_v20 }
  0x72   : > { %5540 = vst [vmem:[#allocation43_spill] sm:$0xff] %v3707_v21 }
  0x73   : > { %5541 = vst [vmem:[#allocation44_spill] sm:$0xff] %v3710_v22 }
  0x74   : > { %v3781_v55 = vmov 0.0   ;;  %v3783_v56 = vmov 0.0   ;;  %v3785_v57 = vmov 0.0   ;;  %v3787_v58 = vmov 0.0  }
  0x75   : > { %v3789_v59 = vmov 0.0   ;;  %v3791_v60 = vmov 0.0   ;;  %v3793_v61 = vmov 0.0   ;;  %v3795_v62 = vmov 0.0  }
  0x76   : > { %v3797_v63 = vmov 0.0   ;;  %v3799_v0 = vmov 0.0   ;;  %v3801_v23 = vmov 0.0   ;;  %v3803_v24 = vmov 0.0  }
  0x77   : > { %v3805_v25 = vmov 0.0   ;;  %v3807_v26 = vmov 0.0   ;;  %v3809_v27 = vmov 0.0   ;;  %v3811_v28 = vmov 0.0  }
  0x78   : > { %v3813_v29 = vmov 0.0   ;;  %v3815_v30 = vmov 0.0   ;;  %v3817_v31 = vmov 0.0   ;;  %v3819_v32 = vmov 0.0  }
  0x79   : > { %v3821_v33 = vmov 0.0   ;;  %v3823_v34 = vmov 0.0   ;;  %v3825_v35 = vmov 0.0   ;;  %v3827_v36 = vmov 0.0  }
  0x7a   : > { %v3829_v37 = vmov 0.0   ;;  %v3831_v38 = vmov 0.0   ;;  %v3833_v39 = vmov 0.0   ;;  %v3835_v40 = vmov 0.0  }
  0x7b   : > { %v3837_v41 = vmov 0.0   ;;  %v3839_v42 = vmov 0.0   ;;  %v3841_v43 = vmov 0.0   ;;  %v3843_v44 = vmov 0.0  }
  0x7c LB: >> { %v5542_v11 = vld [vmem:[#allocation33_spill] sm:$0xff]  ;;  %v5543_v22 = vld [vmem:[#allocation44_spill] sm:$0xff]  ;;  %v5544_v21 = vld [vmem:[#allocation43_spill] sm:$0xff]  ;;  %5551 = vst [vmem:[#allocation45_spill] sm:$0xff] %v3139_v55  ;;  %v5575_v4 = vlaneseq  ;;  %s410_s11 = scvt.s32.f32 %s3267_s21  ;;  %s375_s12 = sadd.s32 1, %s3267_s21   ;;  %v3171_v63 = vphi %v3797_v63, %v5648_v63   ;;  %v3167_v62 = vphi %v3795_v62, %v5647_v62   ;;  %v3163_v61 = vphi %v3793_v61, %v5646_v61   ;;  %v3159_v60 = vphi %v3791_v60, %v5645_v60   ;;  %v3155_v59 = vphi %v3789_v59, %v5644_v59   ;;  %v3151_v58 = vphi %v3787_v58, %v5643_v58   ;;  %v3147_v57 = vphi %v3785_v57, %v5642_v57   ;;  %v3143_v56 = vphi %v3783_v56, %v5641_v56   ;;  %v3139_v55 = vphi %v3781_v55, %v5640_v55   ;;  %s3267_s21 = sphi %s3662_s21, %s5672_s21   ;;  %v3263_v44 = vphi %v3843_v44, %v5671_v44   ;;  %v3259_v43 = vphi %v3841_v43, %v5670_v43   ;;  %v3255_v42 = vphi %v3839_v42, %v5669_v42   ;;  %v3251_v41 = vphi %v3837_v41, %v5668_v41   ;;  %v3247_v40 = vphi %v3835_v40, %v5667_v40   ;;  %v3243_v39 = vphi %v3833_v39, %v5666_v39   ;;  %v3239_v38 = vphi %v3831_v38, %v5665_v38   ;;  %v3235_v37 = vphi %v3829_v37, %v5664_v37   ;;  %v3231_v36 = vphi %v3827_v36, %v5663_v36   ;;  %v3227_v35 = vphi %v3825_v35, %v5662_v35   ;;  %v3223_v34 = vphi %v3823_v34, %v5661_v34   ;;  %v3219_v33 = vphi %v3821_v33, %v5660_v33   ;;  %v3215_v32 = vphi %v3819_v32, %v5659_v32   ;;  %v3211_v31 = vphi %v3817_v31, %v5658_v31   ;;  %v3207_v30 = vphi %v3815_v30, %v5657_v30   ;;  %v3203_v29 = vphi %v3813_v29, %v5656_v29   ;;  %v3199_v28 = vphi %v3811_v28, %v5655_v28   ;;  %v3195_v27 = vphi %v3809_v27, %v5654_v27   ;;  %v3191_v26 = vphi %v3807_v26, %v5653_v26   ;;  %v3187_v25 = vphi %v3805_v25, %v5652_v25   ;;  %v3183_v24 = vphi %v3803_v24, %v5651_v24   ;;  %v3179_v23 = vphi %v3801_v23, %v5650_v23   ;;  %v3175_v0 = vphi %v3799_v0, %v5649_v0  }
  0x7d   : >> { %v5545_v20 = vld [vmem:[#allocation42_spill] sm:$0xff]  ;;  %v5546_v19 = vld [vmem:[#allocation41_spill] sm:$0xff]  ;;  %v5547_v18 = vld [vmem:[#allocation40_spill] sm:$0xff]  ;;  %5552 = vst [vmem:[#allocation46_spill] sm:$0xff] %v3143_v56  ;;  %p5076_p12 = scmp.ge.s32.totalorder %s375_s12, %s3676_s17  ;;  %s5672_s21 = smov %s375_s12 }
  0x7e   : >> { %v5548_v17 = vld [vmem:[#allocation39_spill] sm:$0xff]  ;;  %v5549_v16 = vld [vmem:[#allocation38_spill] sm:$0xff]  ;;  %v5550_v15 = vld [vmem:[#allocation37_spill] sm:$0xff]  ;;  %5553 = vst [vmem:[#allocation47_spill] sm:$0xff] %v3147_v57  ;;  %v3948_v45 = vshrl.u32 %v5575_v4, 7  ;;  %v411_v47 = vstv %s410_s11 }
  0x7f   : >> { %5554 = vst [vmem:[#allocation48_spill] sm:$0xff] %v3151_v58  ;;  %v5576_v1 = vld [vmem:[#allocation24_spill] sm:$0xff]  ;;  %v5577_v2 = vld [vmem:[#allocation25_spill] sm:$0xff]  ;;  %v5578_v3 = vld [vmem:[#allocation26_spill] sm:$0xff] }
  0x80   : >> { %5555 = vst [vmem:[#allocation49_spill] sm:$0xff] %v3155_v59  ;;  %2614 = vset.pattern.permute.xlu2 %v3948_v45  ;;  %2612 = vset.pattern.permute.xlu1 %v3948_v45  ;;  %v3953_v46 = vadd.s32 8, %v3948_v45  ;;  %v412_v48 = vmul.f32 %v411_v47, %v5576_v1  ;;  %v413_v49 = vmul.f32 %v411_v47, %v5577_v2  ;;  %v5579_v5 = vld [vmem:[#allocation27_spill] sm:$0xff]  ;;  %v5580_v6 = vld [vmem:[#allocation28_spill] sm:$0xff]  ;;  %v5581_v8 = vld [vmem:[#allocation30_spill] sm:$0xff] }
  0x81   : >> { %5556 = vst [vmem:[#allocation50_spill] sm:$0xff] %v3159_v60  ;;  %v422_v50 = vmul.f32 %v5578_v3, %v411_v47  ;;  %v423_v51 = vmul.f32 %v5579_v5, %v411_v47  ;;  %v432_v52 = vmul.f32 %v5580_v6, %v411_v47  ;;  %v5582_v9 = vld [vmem:[#allocation31_spill] sm:$0xff]  ;;  %v5583_v10 = vld [vmem:[#allocation32_spill] sm:$0xff]  ;;  %v5584_v12 = vld [vmem:[#allocation34_spill] sm:$0xff] }
  0x82   : >> { %5557 = vst [vmem:[#allocation51_spill] sm:$0xff] %v3163_v61  ;;  %2611 = vset.pattern.permute.xlu0 %v3953_v46  ;;  %v414_v53 = vadd.f32 %v412_v48, %v5581_v8  ;;  %v415_v54 = vadd.f32 %v413_v49, %v5582_v9  ;;  %v5585_v13 = vld [vmem:[#allocation35_spill] sm:$0xff]  ;;  %v5586_v7 = vld [vmem:[#allocation29_spill] sm:$0xff]  ;;  %v5587_v14 = vld [vmem:[#allocation36_spill] sm:$0xff] }
  0x83   : >> { %5558 = vst [vmem:[#allocation52_spill] sm:$0xff] %v3167_v62  ;;  %v424_v4 = vadd.f32 %v5583_v10, %v422_v50  ;;  %v425_v55 = vadd.f32 %v5584_v12, %v423_v51  ;;  %v434_v57 = vadd.f32 %v5585_v13, %v432_v52  ;;  %v433_v3 = vmul.f32 %v5586_v7, %v411_v47 }
  0x84   : >> { %5559 = vst [vmem:[#allocation53_spill] sm:$0xff] %v3171_v63  ;;  %v416_v56 = vadd.f32 0.5, %v414_v53  ;;  %v417_v1 = vadd.f32 0.5, %v415_v54 }
  0x85   : >> { %5560 = vst [vmem:[#allocation54_spill] sm:$0xff] %v3175_v0  ;;  %v426_v59 = vadd.f32 0.5, %v424_v4  ;;  %v427_v2 = vadd.f32 0.5, %v425_v55  ;;  %v436_v60 = vadd.f32 0.5, %v434_v57  ;;  %v435_v50 = vadd.f32 %v5587_v14, %v433_v3 }
  0x86   : >> { %5561 = vst [vmem:[#allocation55_spill] sm:$0xff] %v3179_v23  ;;  %v418_v5 = vfloor.f32 %v416_v56  ;;  %v419_v58 = vfloor.f32 %v417_v1  ;;  %v472_v3 = vstv %s1947_s20 }
  0x87   : >> { %5562 = vst [vmem:[#allocation56_spill] sm:$0xff] %v3183_v24  ;;  %v428_v6 = vfloor.f32 %v426_v59  ;;  %v438_v62 = vfloor.f32 %v436_v60  ;;  %v429_v9 = vfloor.f32 %v427_v2  ;;  %v437_v55 = vadd.f32 0.5, %v435_v50 }
  0x88   : >> { %5563 = vst [vmem:[#allocation57_spill] sm:$0xff] %v3187_v25  ;;  %v1961_v48 = vcvt.f32.s32 %v418_v5  ;;  %v1963_v49 = vcvt.f32.s32 %v419_v58 }
  0x89   : >> { %5564 = vst [vmem:[#allocation58_spill] sm:$0xff] %v3191_v26  ;;  %v1965_v8 = vcvt.f32.s32 %v428_v6  ;;  %v1969_v51 = vcvt.f32.s32 %v438_v62  ;;  %v1967_v56 = vcvt.f32.s32 %v429_v9  ;;  %v439_v6 = vfloor.f32 %v437_v55 }
  0x8a   : >> { %5565 = vst [vmem:[#allocation59_spill] sm:$0xff] %v3195_v27  ;;  %vm442_vm1 = vcmp.ge.s32.totalorder %v1961_v48, 0  ;;  %vm444_vm2 = vcmp.lt.s32.totalorder %v1961_v48, 16  ;;  %v464_v4 = vmul.u32 16, %v1961_v48  ;;  %v465_v5 = vmul.u32 16, %v1963_v49 }
  0x8b   : >> { %5566 = vst [vmem:[#allocation60_spill] sm:$0xff] %v3199_v28  ;;  %vm448_vm3 = vcmp.ge.s32.totalorder %v1965_v8, 0  ;;  %vm452_vm4 = vcmp.lt.s32.totalorder %v1965_v8, 16  ;;  %vm446_vm5 = vmand %vm442_vm1, %vm444_vm2  ;;  %vm456_vm7 = vcmp.ge.s32.totalorder %v1969_v51, 0  ;;  %vm460_vm10 = vcmp.lt.s32.totalorder %v1969_v51, 16 }
  0x8c   : >> { %5567 = vst [vmem:[#allocation61_spill] sm:$0xff] %v3203_v29  ;;  %vm450_vm6 = vmand %vm446_vm5, %vm448_vm3  ;;  %v466_v1 = vadd.s32 %v1965_v8, %v464_v4  ;;  %vm443_vm11 = vcmp.ge.s32.totalorder %v1963_v49, 0  ;;  %vm445_vm12 = vcmp.lt.s32.totalorder %v1963_v49, 16  ;;  %v467_v58 = vadd.s32 %v1967_v56, %v465_v5 }
  0x8d   : >> { %5568 = vst [vmem:[#allocation62_spill] sm:$0xff] %v3207_v30  ;;  %vm454_vm8 = vmand %vm450_vm6, %vm452_vm4  ;;  %vm449_vm15 = vcmp.ge.s32.totalorder %v1967_v56, 0  ;;  %v1971_v60 = vcvt.f32.s32 %v439_v6  ;;  %vm453_vm0 = vcmp.lt.s32.totalorder %v1967_v56, 16 }
  0x8e   : >> { %5569 = vst [vmem:[#allocation63_spill] sm:$0xff] %v3211_v31  ;;  %vm458_vm9 = vmand %vm454_vm8, %vm456_vm7  ;;  %v468_v2 = vmul.u32 16, %v466_v1  ;;  %v469_v8 = vmul.u32 16, %v467_v58  ;;  %v3995_v58 = vperm.slane %v5550_v15, 1 }
  0x8f   : >> { %5570 = vst [vmem:[#allocation64_spill] sm:$0xff] %v3215_v32  ;;  %vm462_vm13 = vmand %vm458_vm9, %vm460_vm10  ;;  %vm457_vm3 = vcmp.ge.s32.totalorder %v1971_v60, 0  ;;  %vm461_vm5 = vcmp.lt.s32.totalorder %v1971_v60, 16 }
  0x90   : >> { %5571 = vst [vmem:[#allocation65_spill] sm:$0xff] %v3223_v34  ;;  %v470_v57 = vadd.s32 %v1969_v51, %v468_v2  ;;  %vm447_vm14 = vmand %vm443_vm11, %vm445_vm12  ;;  %v471_v53 = vadd.s32 %v1971_v60, %v469_v8 }
  0x91   : >> { %5572 = vst [vmem:[#allocation66_spill] sm:$0xff] %v3227_v35  ;;  %vm451_vm1 = vmand %vm447_vm14, %vm449_vm15 }
  0x92   : >> { %5573 = vst [vmem:[#allocation67_spill] sm:$0xff] %v3235_v37  ;;  %v473_v59 = vsub.s32 %v470_v57, %v472_v3  ;;  %vm455_vm2 = vmand %vm451_vm1, %vm453_vm0  ;;  %v474_v48 = vsub.s32 %v471_v53, %v472_v3  ;;  %v3992_v57 = vperm.slane %v5550_v15, 0  ;;  %v4012_v53 = vperm.slane %v5550_v15, 4 }
  0x93   : >> { %5574 = vst [vmem:[#allocation68_spill] sm:$0xff] %v3239_v38  ;;  %vm459_vm4 = vmand %vm455_vm2, %vm457_vm3 }
  0x94   : >> { %v475_v62 = vsel %vm462_vm13, %v473_v59, 4294967295  ;;  %vm463_vm6 = vmand %vm459_vm4, %vm461_vm5  ;;  %v4000_v59 = vperm.slane %v5550_v15, 2 }
  0x95   : >> { %v503_v9 = vperm.slane %v475_v62, 2  ;;  %v490_v47 = vperm.slane %v475_v62, 1  ;;  %v477_v52 = vperm.slane %v475_v62, 0  ;;  %v555_v54 = vperm.slane %v475_v62, 6 }
  0x96   : >> { %v3973_v49 = vsel %vm463_vm6, %v474_v48, 4294967295  ;;  %v516_v51 = vperm.slane %v475_v62, 3  ;;  %v542_v4 = vperm.slane %v475_v62, 5  ;;  %v529_v55 = vperm.slane %v475_v62, 4 }
  0x97   : >> { %508 = vperm.xlu2 %2614, %v503_v9   ;;  %495 = vperm.xlu1 %2612, %v490_v47   ;;  %v620_v50 = vperm.slane %v3973_v49, 3  ;;  %v594_v1 = vperm.slane %v3973_v49, 1  ;;  %v5486_v56 = vperm.slane %v3973_v49, 6  ;;  %v568_v5 = vperm.slane %v475_v62, 7 }
  0x98   : >> { %488 = vperm.xlu0 %2611, %v477_v52   ;;  %v581_v2 = vperm.slane %v3973_v49, 0  ;;  %v607_v3 = vperm.slane %v3973_v49, 2 }
  0x9f   : >> { %2615 = vset.pattern.permute.xlu2 %v3953_v46  ;;  %2613 = vset.pattern.permute.xlu1 %v3953_v46 }
  0xa0   : >> { %566 = vperm.xlu0 %2611, %v555_v54  }
  0xa7   : >> { %514 = vperm.xlu2 %2615, %v503_v9   ;;  %501 = vperm.xlu1 %2613, %v490_v47   ;;  %v4006_v9 = vperm.slane %v5550_v15, 3 }
  0xa8   : >> { %631 = vperm.xlu0 %2611, %v620_v50  }
  0xaf   : >> { %527 = vperm.xlu2 %2615, %v516_v51   ;;  %2616 = vset.pattern.permute.xlu1 %v3948_v45 }
  0xb0   : >> { %2623 = vset.pattern.permute.xlu0 %v3948_v45 }
  0xb7   : >> { %2618 = vset.pattern.permute.xlu2 %v3948_v45  ;;  %521 = vperm.xlu1 %2616, %v516_v51   ;;  %v633_v51 = vperm.slane %v3973_v49, 4 }
  0xb8   : >> { %482 = vperm.xlu0 %2623, %v477_v52  }
  0xbf   : >> { %547 = vperm.xlu2 %2618, %v542_v4   ;;  %2617 = vset.pattern.permute.xlu1 %v3953_v46 }
  0xc0   : >> { %534 = vperm.xlu0 %2623, %v529_v55  }
  0xc7   : >> { %560 = vperm.xlu2 %2618, %v555_v54   ;;  %540 = vperm.xlu1 %2617, %v529_v55  }
  0xc8   : >> { %599 = vperm.xlu0 %2623, %v594_v1  }
  0xcf   : >> { %2620 = vset.pattern.permute.xlu2 %v3953_v46  ;;  %553 = vperm.xlu1 %2617, %v542_v4   ;;  %v4021_v4 = vperm.slane %v5550_v15, 5 }
  0xd0   : >> { %664 = vperm.xlu0 %2623, %v5486_v56  }
  0xd7   : >> { %579 = vperm.xlu2 %2620, %v568_v5   ;;  %2619 = vset.pattern.permute.xlu1 %v3948_v45 }
  0xd8   : >> { %2628 = vset.pattern.permute.xlu0 %v3953_v46 }
  0xdf   : >> { %592 = vperm.xlu2 %2620, %v581_v2   ;;  %573 = vperm.xlu1 %2619, %v568_v5  }
  0xe7   : >> { %2622 = vset.pattern.permute.xlu2 %v3948_v45  ;;  %586 = vperm.xlu1 %2619, %v581_v2   ;;  %v4028_v2 = vperm.slane %v5550_v15, 6 }
  0xef   : >> { %612 = vperm.xlu2 %2622, %v607_v3   ;;  %2621 = vset.pattern.permute.xlu1 %v3953_v46 }
  0xf1   : >> { %v509_v6 = vpop.permute.xlu2 %508 }
  0xf2   : >> { %vm717_vm7 = vcmp.eq.s32.totalorder %v509_v6, %v5542_v11  ;;  %vm718_vm8 = vcmp.eq.s32.totalorder %v509_v6, %v5549_v16  ;;  %vm719_vm9 = vcmp.eq.s32.totalorder %v509_v6, %v5548_v17  ;;  %vm720_vm10 = vcmp.eq.s32.totalorder %v509_v6, %v5547_v18 }
  0xf3   : >> { %v990_v60 = vsel %vm717_vm7, %v3992_v57, 0.0  ;;  %v991_v62 = vsel %vm718_vm8, %v3995_v58, 0.0  ;;  %v992_v47 = vsel %vm719_vm9, %v4000_v59, 0.0  ;;  %v993_v54 = vsel %vm720_vm10, %v4006_v9, 0.0 }
  0xf4   : >> { %v1250_v8 = vadd.f32 %v991_v62, %v990_v60  ;;  %vm721_vm11 = vcmp.eq.s32.totalorder %v509_v6, %v5546_v19  ;;  %vm722_vm15 = vcmp.eq.s32.totalorder %v509_v6, %v5545_v20  ;;  %v4032_v60 = vperm.slane %v5550_v15, 7 }
  0xf5   : >> { %v994_v55 = vsel %vm721_vm11, %v4012_v53, 0.0  ;;  %vm723_vm1 = vcmp.eq.s32.totalorder %v509_v6, %v5544_v21  ;;  %vm724_vm2 = vcmp.eq.s32.totalorder %v509_v6, %v5543_v22 }
  0xf6   : >> { %v1251_v52 = vadd.f32 %v1250_v8, %v992_v47  ;;  %v995_v47 = vsel %vm722_vm15, %v4021_v4, 0.0 }
  0xf7   : >> { %625 = vperm.xlu2 %2622, %v620_v50   ;;  %605 = vperm.xlu1 %2621, %v594_v1  }
  0xf8   : >> { %v1252_v50 = vadd.f32 %v1251_v52, %v993_v54  ;;  %v646_v54 = vperm.slane %v3973_v49, 5 }
  0xfa   : >> { %v1253_v8 = vadd.f32 %v1252_v50, %v994_v55  ;;  %v996_v55 = vsel %vm723_vm1, %v4028_v2, 0.0 }
  0xff   : >> { %2625 = vset.pattern.permute.xlu2 %v3953_v46  ;;  %618 = vperm.xlu1 %2621, %v607_v3  }
 0x101   : >> { %v515_v48 = vpop.permute.xlu2 %514 }
 0x102   : >> { %vm725_vm12 = vcmp.eq.s32.totalorder %v515_v48, %v5542_v11  ;;  %vm726_vm13 = vcmp.eq.s32.totalorder %v515_v48, %v5549_v16  ;;  %vm727_vm14 = vcmp.eq.s32.totalorder %v515_v48, %v5548_v17  ;;  %vm728_vm0 = vcmp.eq.s32.totalorder %v515_v48, %v5547_v18 }
 0x103   : >> { %v998_v1 = vsel %vm725_vm12, %v3992_v57, 0.0  ;;  %v999_v5 = vsel %vm726_vm13, %v3995_v58, 0.0  ;;  %v1000_v3 = vsel %vm727_vm14, %v4000_v59, 0.0  ;;  %v1001_v56 = vsel %vm728_vm0, %v4006_v9, 0.0 }
 0x104   : >> { %v1259_v62 = vadd.f32 %v999_v5, %v998_v1  ;;  %v997_v1 = vsel %vm724_vm2, %v4032_v60, 0.0  ;;  %v1254_v5 = vadd.f32 %v1253_v8, %v995_v47  ;;  %vm729_vm6 = vcmp.eq.s32.totalorder %v515_v48, %v5546_v19 }
 0x105   : >> { %vm730_vm7 = vcmp.eq.s32.totalorder %v515_v48, %v5545_v20  ;;  %vm731_vm8 = vcmp.eq.s32.totalorder %v515_v48, %v5544_v21  ;;  %vm732_vm9 = vcmp.eq.s32.totalorder %v515_v48, %v5543_v22  ;;  %v1002_v47 = vsel %vm729_vm6, %v4012_v53, 0.0 }
 0x106   : >> { %v1260_v52 = vadd.f32 %v1259_v62, %v1000_v3  ;;  %v1255_v50 = vadd.f32 %v1254_v5, %v996_v55  ;;  %v1004_v12 = vsel %vm731_vm8, %v4028_v2, 0.0 }
 0x107   : >> { %644 = vperm.xlu2 %2625, %v633_v51   ;;  %2624 = vset.pattern.permute.xlu1 %v3948_v45 }
 0x108   : >> { %v1261_v6 = vadd.f32 %v1260_v52, %v1001_v56  ;;  %v1003_v52 = vsel %vm730_vm7, %v4021_v4, 0.0  ;;  %v4093_v15 = vadd.f32 %v1255_v50, %v997_v1 }
 0x109   : >> { %v4041_v7 = vpop.permute.xlu1 %495 }
 0x10a   : >> { %v4043_v10 = vpop.permute.xlu0 %488  ;;  %vm701_vm11 = vcmp.eq.s32.totalorder %v4041_v7, %v5542_v11  ;;  %vm702_vm12 = vcmp.eq.s32.totalorder %v4041_v7, %v5549_v16  ;;  %v1262_v13 = vadd.f32 %v1261_v6, %v1002_v47  ;;  %vm703_vm15 = vcmp.eq.s32.totalorder %v4041_v7, %v5548_v17 }
 0x10b   : >> { %vm693_vm3 = vcmp.eq.s32.totalorder %v4043_v10, %v5542_v11  ;;  %vm694_vm4 = vcmp.eq.s32.totalorder %v4043_v10, %v5549_v16  ;;  %vm695_vm5 = vcmp.eq.s32.totalorder %v4043_v10, %v5548_v17  ;;  %vm696_vm10 = vcmp.eq.s32.totalorder %v4043_v10, %v5547_v18 }
 0x10c   : >> { %v966_v3 = vsel %vm693_vm3, %v3992_v57, 0.0  ;;  %v967_v62 = vsel %vm694_vm4, %v3995_v58, 0.0  ;;  %v968_v8 = vsel %vm695_vm5, %v4000_v59, 0.0  ;;  %vm697_vm13 = vcmp.eq.s32.totalorder %v4043_v10, %v5546_v19 }
 0x10d   : >> { %v1223_v56 = vadd.f32 %v967_v62, %v966_v3  ;;  %vm698_vm14 = vcmp.eq.s32.totalorder %v4043_v10, %v5545_v20  ;;  %v969_v55 = vsel %vm696_vm10, %v4006_v9, 0.0  ;;  %v974_v5 = vsel %vm701_vm11, %v3992_v57, 0.0  ;;  %v4083_v3 = vpop.permute.xlu2 %527 }
 0x10e   : >> { %v975_v14 = vsel %vm702_vm12, %v3995_v58, 0.0  ;;  %vm699_vm0 = vcmp.eq.s32.totalorder %v4043_v10, %v5544_v21  ;;  %vm700_vm1 = vcmp.eq.s32.totalorder %v4043_v10, %v5543_v22  ;;  %v970_v48 = vsel %vm697_vm13, %v4012_v53, 0.0 }
 0x10f   : >> { %657 = vperm.xlu2 %2625, %v646_v54   ;;  %638 = vperm.xlu1 %2624, %v633_v51   ;;  %v1005_v51 = vsel %vm732_vm9, %v4032_v60, 0.0  ;;  %v1224_v62 = vadd.f32 %v1223_v56, %v968_v8  ;;  %v971_v61 = vsel %vm698_vm14, %v4021_v4, 0.0  ;;  %vm704_vm2 = vcmp.eq.s32.totalorder %v4041_v7, %v5547_v18 }
 0x110   : >> { %v1232_v6 = vadd.f32 %v975_v14, %v974_v5  ;;  %vm705_vm3 = vcmp.eq.s32.totalorder %v4041_v7, %v5546_v19  ;;  %v976_v8 = vsel %vm703_vm15, %v4000_v59, 0.0  ;;  %vm741_vm4 = vcmp.eq.s32.totalorder %v4083_v3, %v5542_v11 }
 0x111   : >> { %v1225_v23 = vadd.f32 %v1224_v62, %v969_v55  ;;  %vm742_vm5 = vcmp.eq.s32.totalorder %v4083_v3, %v5549_v16  ;;  %v1263_v1 = vadd.f32 %v1262_v13, %v1003_v52  ;;  %vm706_vm6 = vcmp.eq.s32.totalorder %v4041_v7, %v5545_v20 }
 0x112   : >> { %v1233_v47 = vadd.f32 %v1232_v6, %v976_v8  ;;  %v972_v14 = vsel %vm699_vm0, %v4028_v2, 0.0  ;;  %vm707_vm7 = vcmp.eq.s32.totalorder %v4041_v7, %v5544_v21  ;;  %vm708_vm8 = vcmp.eq.s32.totalorder %v4041_v7, %v5543_v22  ;;  %v4119_v5 = vpop.permute.xlu0 %566 }
 0x113   : >> { %v1226_v50 = vadd.f32 %v1225_v23, %v970_v48  ;;  %v977_v56 = vsel %vm704_vm2, %v4006_v9, 0.0  ;;  %v1014_v52 = vsel %vm741_vm4, %v3992_v57, 0.0  ;;  %v1015_v55 = vsel %vm742_vm5, %v3995_v58, 0.0 }
 0x114   : >> { %v1234_v23 = vadd.f32 %v1233_v47, %v977_v56  ;;  %v973_v62 = vsel %vm700_vm1, %v4032_v60, 0.0  ;;  %v978_v48 = vsel %vm705_vm3, %v4012_v53, 0.0  ;;  %vm743_vm9 = vcmp.eq.s32.totalorder %v4083_v3, %v5548_v17 }
 0x115   : >> { %v1227_v13 = vadd.f32 %v1226_v50, %v971_v61  ;;  %v1264_v6 = vadd.f32 %v1263_v1, %v1004_v12  ;;  %v980_v10 = vsel %vm707_vm7, %v4028_v2, 0.0  ;;  %v981_v8 = vsel %vm708_vm8, %v4032_v60, 0.0 }
 0x116   : >> { %vm744_vm12 = vcmp.eq.s32.totalorder %v4083_v3, %v5547_v18  ;;  %v1277_v12 = vadd.f32 %v1015_v55, %v1014_v52  ;;  %v1235_v1 = vadd.f32 %v1234_v23, %v978_v48  ;;  %vm745_vm13 = vcmp.eq.s32.totalorder %v4083_v3, %v5546_v19 }
 0x117   : >> { %2627 = vset.pattern.permute.xlu2 %v3948_v45  ;;  %651 = vperm.xlu1 %2624, %v646_v54   ;;  %v979_v45 = vsel %vm706_vm6, %v4021_v4, 0.0  ;;  %v1228_v54 = vadd.f32 %v1227_v13, %v972_v14  ;;  %v1016_v47 = vsel %vm743_vm9, %v4000_v59, 0.0  ;;  %vm746_vm15 = vcmp.eq.s32.totalorder %v4083_v3, %v5545_v20 }
 0x118   : >> { %v1265_v56 = vadd.f32 %v1264_v6, %v1005_v51  ;;  %vm747_vm0 = vcmp.eq.s32.totalorder %v4083_v3, %v5544_v21  ;;  %vm748_vm1 = vcmp.eq.s32.totalorder %v4083_v3, %v5543_v22  ;;  %v1017_v13 = vsel %vm744_vm12, %v4006_v9, 0.0 }
 0x119   : >> { %v4132_v61 = vpop.permute.xlu1 %501  ;;  %v1229_v50 = vadd.f32 %v1228_v54, %v973_v62  ;;  %v548_v23 = vpop.permute.xlu2 %547  ;;  %v1018_v55 = vsel %vm745_vm13, %v4012_v53, 0.0  ;;  %v1278_v62 = vadd.f32 %v1277_v12, %v1016_v47  ;;  %v5589_v48 = vperm.slane %v3973_v49, 7 }
 0x11a   : >> { %vm709_vm10 = vcmp.eq.s32.totalorder %v4132_v61, %v5542_v11  ;;  %vm710_vm11 = vcmp.eq.s32.totalorder %v4132_v61, %v5549_v16  ;;  %vm711_vm14 = vcmp.eq.s32.totalorder %v4132_v61, %v5548_v17  ;;  %vm712_vm2 = vcmp.eq.s32.totalorder %v4132_v61, %v5547_v18  ;;  %v4188_v47 = vpop.permute.xlu0 %631 }
 0x11b   : >> { %v982_v7 = vsel %vm709_vm10, %v3992_v57, 0.0  ;;  %v983_v14 = vsel %vm710_vm11, %v3995_v58, 0.0  ;;  %1230 = vadd.xlane.f32.xlu0 %v1229_v50  ;;  %v984_v51 = vsel %vm711_vm14, %v4000_v59, 0.0  ;;  %v1236_v54 = vadd.f32 %v1235_v1, %v979_v45 }
 0x11c   : >> { %v1241_v52 = vadd.f32 %v983_v14, %v982_v7  ;;  %v1019_v6 = vsel %vm746_vm15, %v4021_v4, 0.0  ;;  %vm765_vm3 = vcmp.eq.s32.totalorder %v548_v23, %v5542_v11  ;;  %vm713_vm4 = vcmp.eq.s32.totalorder %v4132_v61, %v5546_v19 }
 0x11d   : >> { %v1279_v12 = vadd.f32 %v1278_v62, %v1017_v13  ;;  %vm766_vm5 = vcmp.eq.s32.totalorder %v548_v23, %v5549_v16  ;;  %vm714_vm6 = vcmp.eq.s32.totalorder %v4132_v61, %v5545_v20  ;;  %v1020_v45 = vsel %vm747_vm0, %v4028_v2, 0.0 }
 0x11e   : >> { %v1242_v50 = vadd.f32 %v1241_v52, %v984_v51  ;;  %v1021_v1 = vsel %vm748_vm1, %v4032_v60, 0.0  ;;  %vm767_vm7 = vcmp.eq.s32.totalorder %v548_v23, %v5548_v17  ;;  %v1038_v13 = vsel %vm765_vm3, %v3992_v57, 0.0 }
 0x11f   : >> { %677 = vperm.xlu2 %2627, %v5589_v48   ;;  %2626 = vset.pattern.permute.xlu1 %v3953_v46  ;;  %v985_v46 = vsel %vm712_vm2, %v4006_v9, 0.0  ;;  %v1280_v14 = vadd.f32 %v1279_v12, %v1018_v55  ;;  %vm715_vm8 = vcmp.eq.s32.totalorder %v4132_v61, %v5544_v21  ;;  %v986_v52 = vsel %vm713_vm4, %v4012_v53, 0.0 }
 0x120   : >> { %v1243_v7 = vadd.f32 %v1242_v50, %v985_v46  ;;  %v1237_v62 = vadd.f32 %v1236_v54, %v980_v10  ;;  %v1039_v48 = vsel %vm766_vm5, %v3995_v58, 0.0  ;;  %vm716_vm9 = vcmp.eq.s32.totalorder %v4132_v61, %v5543_v22 }
 0x121   : >> { %v987_v3 = vsel %vm714_vm6, %v4021_v4, 0.0  ;;  %v1281_v50 = vadd.f32 %v1280_v14, %v1019_v6  ;;  %vm768_vm10 = vcmp.eq.s32.totalorder %v548_v23, %v5547_v18  ;;  %vm769_vm11 = vcmp.eq.s32.totalorder %v548_v23, %v5546_v19 }
 0x122   : >> { %v1244_v51 = vadd.f32 %v1243_v7, %v986_v52  ;;  %v1040_v55 = vsel %vm767_vm7, %v4000_v59, 0.0  ;;  %v1304_v12 = vadd.f32 %v1039_v48, %v1038_v13  ;;  %vm770_vm12 = vcmp.eq.s32.totalorder %v548_v23, %v5545_v20 }
 0x123   : >> { %1266 = vadd.xlane.f32.xlu0 %v1265_v56  ;;  %v1282_v0 = vadd.f32 %v1281_v50, %v1020_v45  ;;  %vm771_vm13 = vcmp.eq.s32.totalorder %v548_v23, %v5544_v21  ;;  %v5590_v10 = vperm.slane %v3973_v49, 6  ;;  %v988_v56 = vsel %vm715_vm8, %v4028_v2, 0.0 }
 0x124   : >> { %v1245_v46 = vadd.f32 %v1244_v51, %v987_v3  ;;  %v989_v54 = vsel %vm716_vm9, %v4032_v60, 0.0  ;;  %v4211_v6 = vadd.f32 %v1237_v62, %v981_v8  ;;  %vm772_vm14 = vcmp.eq.s32.totalorder %v548_v23, %v5543_v22 }
 0x125   : >> { %v1041_v45 = vsel %vm768_vm10, %v4006_v9, 0.0  ;;  %v4216_v7 = vsel %vm769_vm11, %v4012_v53, 0.0  ;;  %v1305_v14 = vadd.f32 %v1304_v12, %v1040_v55  ;;  %vm789_vm15 = vcmp.eq.s32.totalorder %v4119_v5, %v5542_v11 }
 0x126   : >> { %v4221_v13 = vsel %vm770_vm12, %v4021_v4, 0.0  ;;  %v4224_v61 = vsel %vm771_vm13, %v4028_v2, 0.0  ;;  %vm790_vm0 = vcmp.eq.s32.totalorder %v4119_v5, %v5549_v16  ;;  %vm791_vm1 = vcmp.eq.s32.totalorder %v4119_v5, %v5548_v17 }
 0x127   : >> { %670 = vperm.xlu1 %2626, %v5590_v10   ;;  %v1246_v23 = vadd.f32 %v1245_v46, %v988_v56  ;;  %v4230_v52 = vadd.f32 %v1282_v0, %v1021_v1  ;;  %v4233_v62 = vsel %vm772_vm14, %v4032_v60, 0.0  ;;  %vm792_vm2 = vcmp.eq.s32.totalorder %v4119_v5, %v5547_v18 }
 0x128   : >> { %v4243_v3 = vsel %vm789_vm15, %v3992_v57, 0.0  ;;  %v1306_v0 = vadd.f32 %v1305_v14, %v1041_v45  ;;  %v4247_v1 = vsel %vm790_vm0, %v3995_v58, 0.0  ;;  %v4250_v51 = vsel %vm791_vm1, %v4000_v59, 0.0  ;;  %v4273_v14 = vpop.permute.xlu2 %560 }
 0x129   : >> { %v4237_v48 = vpop.permute.xlu1 %521  ;;  %v5591_v46 = vperm.slane %v3973_v49, 7  ;;  %v4265_v56 = vadd.f32 %v1246_v23, %v989_v54  ;;  %v4271_v45 = vsel %vm792_vm2, %v4006_v9, 0.0  ;;  %vm793_vm14 = vcmp.eq.s32.totalorder %v4119_v5, %v5546_v19 }
 0x12a   : >> { %v483_v8 = vpop.permute.xlu0 %482  ;;  %vm733_vm10 = vcmp.eq.s32.totalorder %v4237_v48, %v5542_v11  ;;  %vm734_vm11 = vcmp.eq.s32.totalorder %v4237_v48, %v5549_v16  ;;  %vm735_vm13 = vcmp.eq.s32.totalorder %v4237_v48, %v5548_v17  ;;  %vm736_vm15 = vcmp.eq.s32.totalorder %v4237_v48, %v5547_v18 }
 0x12b   : >> { %vm685_vm3 = vcmp.eq.s32.totalorder %v483_v8, %v5542_v11  ;;  %vm686_vm4 = vcmp.eq.s32.totalorder %v483_v8, %v5549_v16  ;;  %vm687_vm5 = vcmp.eq.s32.totalorder %v483_v8, %v5548_v17  ;;  %vm688_vm6 = vcmp.eq.s32.totalorder %v483_v8, %v5547_v18 }
 0x12c   : >> { %vm689_vm7 = vcmp.eq.s32.totalorder %v483_v8, %v5546_v19  ;;  %vm690_vm8 = vcmp.eq.s32.totalorder %v483_v8, %v5545_v20  ;;  %v958_v50 = vsel %vm685_vm3, %v3992_v57, 0.0  ;;  %v959_v55 = vsel %vm686_vm4, %v3995_v58, 0.0 }
 0x12d   : >> { %vm691_vm9 = vcmp.eq.s32.totalorder %v483_v8, %v5544_v21  ;;  %v960_v12 = vsel %vm687_vm5, %v4000_v59, 0.0  ;;  %vm692_vm12 = vcmp.eq.s32.totalorder %v483_v8, %v5543_v22  ;;  %v1214_v10 = vadd.f32 %v959_v55, %v958_v50 }
 0x12e   : >> { %v961_v26 = vsel %vm688_vm6, %v4006_v9, 0.0  ;;  %v962_v49 = vsel %vm689_vm7, %v4012_v53, 0.0  ;;  %v964_v54 = vsel %vm691_vm9, %v4028_v2, 0.0  ;;  %v1006_v50 = vsel %vm733_vm10, %v3992_v57, 0.0 }
 0x12f   : >> { %683 = vperm.xlu1 %2626, %v5591_v46   ;;  %v963_v46 = vsel %vm690_vm8, %v4021_v4, 0.0  ;;  %v1215_v23 = vadd.f32 %v1214_v10, %v960_v12  ;;  %v1007_v55 = vsel %vm734_vm11, %v3995_v58, 0.0  ;;  %v965_v8 = vsel %vm692_vm12, %v4032_v60, 0.0 }
 0x130   : >> { %vm737_vm0 = vcmp.eq.s32.totalorder %v4237_v48, %v5546_v19  ;;  %vm738_vm1 = vcmp.eq.s32.totalorder %v4237_v48, %v5545_v20  ;;  %vm794_vm2 = vcmp.eq.s32.totalorder %v4119_v5, %v5545_v20  ;;  %vm795_vm3 = vcmp.eq.s32.totalorder %v4119_v5, %v5544_v21 }
 0x131   : >> { %v1216_v12 = vadd.f32 %v1215_v23, %v961_v26  ;;  %vm796_vm7 = vcmp.eq.s32.totalorder %v4119_v5, %v5543_v22  ;;  %vm739_vm8 = vcmp.eq.s32.totalorder %v4237_v48, %v5544_v21  ;;  %vm740_vm9 = vcmp.eq.s32.totalorder %v4237_v48, %v5543_v22 }
 0x132   : >> { %v535_v25 = vpop.permute.xlu0 %534  ;;  %v1008_v26 = vsel %vm735_vm13, %v4000_v59, 0.0  ;;  %v1268_v10 = vadd.f32 %v1007_v55, %v1006_v50  ;;  %v1009_v24 = vsel %vm736_vm15, %v4006_v9, 0.0  ;;  %v4327_v55 = vpop.permute.xlu2 %579  ;;  %v1307_v27 = vadd.f32 %v1306_v0, %v4216_v7 }
 0x133   : >> { %vm749_vm4 = vcmp.eq.s32.totalorder %v535_v25, %v5542_v11  ;;  %vm750_vm5 = vcmp.eq.s32.totalorder %v535_v25, %v5549_v16  ;;  %vm751_vm6 = vcmp.eq.s32.totalorder %v535_v25, %v5548_v17  ;;  %v1217_v23 = vadd.f32 %v1216_v12, %v962_v49 }
 0x134   : >> { %vm752_vm10 = vcmp.eq.s32.totalorder %v535_v25, %v5547_v18  ;;  %v1022_v63 = vsel %vm749_vm4, %v3992_v57, 0.0  ;;  %v1023_v29 = vsel %vm750_vm5, %v3995_v58, 0.0  ;;  %vm753_vm11 = vcmp.eq.s32.totalorder %v535_v25, %v5546_v19 }
 0x135   : >> { %v1024_v28 = vsel %vm751_vm6, %v4000_v59, 0.0  ;;  %v1010_v49 = vsel %vm737_vm0, %v4012_v53, 0.0  ;;  %vm754_vm12 = vcmp.eq.s32.totalorder %v535_v25, %v5545_v20  ;;  %vm755_vm13 = vcmp.eq.s32.totalorder %v535_v25, %v5544_v21 }
 0x136   : >> { %vm756_vm4 = vcmp.eq.s32.totalorder %v535_v25, %v5543_v22  ;;  %v1286_v50 = vadd.f32 %v1023_v29, %v1022_v63  ;;  %v1218_v12 = vadd.f32 %v1217_v23, %v963_v46  ;;  %v1025_v32 = vsel %vm752_vm10, %v4006_v9, 0.0 }
 0x137   : >> { %v1269_v31 = vadd.f32 %v1268_v10, %v1008_v26  ;;  %v1011_v30 = vsel %vm738_vm1, %v4021_v4, 0.0  ;;  %v1012_v63 = vsel %vm739_vm8, %v4028_v2, 0.0  ;;  %v4343_v29 = vsel %vm740_vm9, %v4032_v60, 0.0 }
 0x138   : >> { %v1287_v34 = vadd.f32 %v1286_v50, %v1024_v28  ;;  %v1026_v28 = vsel %vm753_vm11, %v4012_v53, 0.0  ;;  %v1027_v7 = vsel %vm754_vm12, %v4021_v4, 0.0  ;;  %v1308_v46 = vadd.f32 %v1307_v27, %v4221_v13 }
 0x139   : >> { %v541_v35 = vpop.permute.xlu1 %540  ;;  %v1270_v0 = vadd.f32 %v1269_v31, %v1009_v24  ;;  %v1028_v26 = vsel %vm755_vm13, %v4028_v2, 0.0  ;;  %v1029_v10 = vsel %vm756_vm4, %v4032_v60, 0.0  ;;  %v4360_v23 = vsel %vm793_vm14, %v4012_v53, 0.0 }
 0x13a   : >> { %v1288_v48 = vadd.f32 %v1287_v34, %v1025_v32  ;;  %v1219_v50 = vadd.f32 %v1218_v12, %v964_v54  ;;  %vm757_vm15 = vcmp.eq.s32.totalorder %v541_v35, %v5542_v11  ;;  %vm758_vm0 = vcmp.eq.s32.totalorder %v541_v35, %v5549_v16 }
 0x13b   : >> { %v1271_v38 = vadd.f32 %v1270_v0, %v1010_v49  ;;  %v1309_v27 = vadd.f32 %v1308_v46, %v4224_v61  ;;  %v4369_v25 = vsel %vm794_vm2, %v4021_v4, 0.0  ;;  %v4375_v31 = vsel %vm795_vm3, %v4028_v2, 0.0 }
 0x13c   : >> { %v1289_v24 = vadd.f32 %v1288_v48, %v1026_v28  ;;  %vm759_vm14 = vcmp.eq.s32.totalorder %v541_v35, %v5548_v17  ;;  %vm760_vm1 = vcmp.eq.s32.totalorder %v541_v35, %v5547_v18  ;;  %vm761_vm5 = vcmp.eq.s32.totalorder %v541_v35, %v5546_v19 }
 0x13d   : >> { %v4384_v32 = vsel %vm796_vm7, %v4032_v60, 0.0  ;;  %v1272_v13 = vadd.f32 %v1271_v38, %v1011_v30  ;;  %v1030_v61 = vsel %vm757_vm15, %v3992_v57, 0.0  ;;  %v1031_v54 = vsel %vm758_vm0, %v3995_v58, 0.0  ;;  %v593_v38 = vpop.permute.xlu2 %592 }
 0x13e   : >> { %v1290_v34 = vadd.f32 %v1289_v24, %v1027_v7  ;;  %v1220_v49 = vadd.f32 %v1219_v50, %v965_v8  ;;  %vm762_vm2 = vcmp.eq.s32.totalorder %v541_v35, %v5545_v20  ;;  %vm763_vm3 = vcmp.eq.s32.totalorder %v541_v35, %v5544_v21 }
 0x13f   : >> { %vm764_vm6 = vcmp.eq.s32.totalorder %v541_v35, %v5543_v22  ;;  %v4392_v0 = vadd.f32 %v1309_v27, %v4233_v62  ;;  %v1032_v5 = vsel %vm759_vm14, %v4000_v59, 0.0  ;;  %v1033_v30 = vsel %vm760_vm1, %v4006_v9, 0.0 }
 0x140   : >> { %v1291_v28 = vadd.f32 %v1290_v34, %v1028_v26  ;;  %v1034_v8 = vsel %vm761_vm5, %v4012_v53, 0.0  ;;  %v1295_v7 = vadd.f32 %v1031_v54, %v1030_v61  ;;  %v1273_v48 = vadd.f32 %v1272_v13, %v1012_v63 }
 0x141   : >> { %v554_v12 = vpop.permute.xlu1 %553  ;;  %v1035_v26 = vsel %vm762_vm2, %v4021_v4, 0.0  ;;  %v1036_v62 = vsel %vm763_vm3, %v4028_v2, 0.0  ;;  %vm821_vm12 = vcmp.eq.s32.totalorder %v593_v38, %v5542_v11  ;;  %vm822_vm13 = vcmp.eq.s32.totalorder %v593_v38, %v5549_v16 }
 0x142   : >> { %vm773_vm7 = vcmp.eq.s32.totalorder %v554_v12, %v5542_v11  ;;  %vm774_vm8 = vcmp.eq.s32.totalorder %v554_v12, %v5549_v16  ;;  %v1292_v46 = vadd.f32 %v1291_v28, %v1029_v10  ;;  %vm775_vm9 = vcmp.eq.s32.totalorder %v554_v12, %v5548_v17 }
 0x143   : >> { %vm776_vm10 = vcmp.eq.s32.totalorder %v554_v12, %v5547_v18  ;;  %v1046_v50 = vsel %vm773_vm7, %v3992_v57, 0.0  ;;  %v1047_v24 = vsel %vm774_vm8, %v3995_v58, 0.0  ;;  %vm777_vm11 = vcmp.eq.s32.totalorder %v554_v12, %v5546_v19 }
 0x144   : >> { %1293 = vadd.xlane.f32.xlu0 %v1292_v46  ;;  %v1037_v10 = vsel %vm764_vm6, %v4032_v60, 0.0  ;;  %vm778_vm4 = vcmp.eq.s32.totalorder %v554_v12, %v5545_v20  ;;  %vm779_vm15 = vcmp.eq.s32.totalorder %v554_v12, %v5544_v21  ;;  %v1313_v63 = vadd.f32 %v1047_v24, %v1046_v50 }
 0x145   : >> { %v1296_v27 = vadd.f32 %v1295_v7, %v1032_v5  ;;  %vm780_vm0 = vcmp.eq.s32.totalorder %v554_v12, %v5543_v22  ;;  %v1048_v34 = vsel %vm775_vm9, %v4000_v59, 0.0  ;;  %v1049_v13 = vsel %vm776_vm10, %v4006_v9, 0.0 }
 0x146   : >> { %vm823_vm14 = vcmp.eq.s32.totalorder %v593_v38, %v5548_v17  ;;  %v1050_v35 = vsel %vm777_vm11, %v4012_v53, 0.0  ;;  %v1314_v61 = vadd.f32 %v1313_v63, %v1048_v34  ;;  %v1094_v28 = vsel %vm821_vm12, %v3992_v57, 0.0 }
 0x147   : >> { %v1297_v54 = vadd.f32 %v1296_v27, %v1033_v30  ;;  %v1051_v46 = vsel %vm778_vm4, %v4021_v4, 0.0  ;;  %v1052_v50 = vsel %vm779_vm15, %v4028_v2, 0.0  ;;  %vm824_vm1 = vcmp.eq.s32.totalorder %v593_v38, %v5547_v18 }
 0x148   : >> { %1221 = vadd.xlane.f32.xlu2 %v1220_v49  ;;  %v1095_v5 = vsel %vm822_vm13, %v3995_v58, 0.0  ;;  %v1315_v7 = vadd.f32 %v1314_v61, %v1049_v13  ;;  %vm825_vm5 = vcmp.eq.s32.totalorder %v593_v38, %v5546_v19  ;;  %v1096_v49 = vsel %vm823_vm14, %v4000_v59, 0.0 }
 0x149   : >> { %v1298_v24 = vadd.f32 %v1297_v54, %v1034_v8  ;;  %vm826_vm2 = vcmp.eq.s32.totalorder %v593_v38, %v5545_v20  ;;  %vm827_vm3 = vcmp.eq.s32.totalorder %v593_v38, %v5544_v21  ;;  %v1367_v30 = vadd.f32 %v1095_v5, %v1094_v28 }
 0x14a   : >> { %v1331_v63 = vadd.f32 %v4247_v1, %v4243_v3  ;;  %v1316_v27 = vadd.f32 %v1315_v7, %v1050_v35  ;;  %vm828_vm6 = vcmp.eq.s32.totalorder %v593_v38, %v5543_v22  ;;  %v1097_v37 = vsel %vm824_vm1, %v4006_v9, 0.0 }
 0x14b   : >> { %v1299_v34 = vadd.f32 %v1298_v24, %v1035_v26  ;;  %v1053_v8 = vsel %vm780_vm0, %v4032_v60, 0.0  ;;  %v4439_v13 = vadd.f32 %v1273_v48, %v4343_v29  ;;  %v1368_v61 = vadd.f32 %v1367_v30, %v1096_v49 }
 0x14c   : >> { %v1332_v54 = vadd.f32 %v1331_v63, %v4250_v51  ;;  %v1317_v28 = vadd.f32 %v1316_v27, %v1051_v46  ;;  %v1098_v5 = vsel %vm825_vm5, %v4012_v53, 0.0  ;;  %v1099_v3 = vsel %vm826_vm2, %v4021_v4, 0.0 }
 0x14d   : >> { %v4445_v1 = vsel %vm827_vm3, %v4028_v2, 0.0  ;;  %v1300_v38 = vadd.f32 %v1299_v34, %v1036_v62  ;;  %v4448_v26 = vsel %vm828_vm6, %v4032_v60, 0.0  ;;  %v1369_v12 = vadd.f32 %v1368_v61, %v1097_v37  ;;  %v613_v34 = vpop.permute.xlu2 %612 }
 0x14e   : >> { %vm781_vm7 = vcmp.eq.s32.totalorder %v4273_v14, %v5542_v11  ;;  %v1318_v29 = vadd.f32 %v1317_v28, %v1052_v50  ;;  %vm782_vm8 = vcmp.eq.s32.totalorder %v4273_v14, %v5549_v16  ;;  %vm783_vm9 = vcmp.eq.s32.totalorder %v4273_v14, %v5548_v17 }
 0x14f   : >> { %vm784_vm10 = vcmp.eq.s32.totalorder %v4273_v14, %v5547_v18  ;;  %v1333_v48 = vadd.f32 %v1332_v54, %v4271_v45  ;;  %vm785_vm11 = vcmp.eq.s32.totalorder %v4273_v14, %v5546_v19  ;;  %vm786_vm12 = vcmp.eq.s32.totalorder %v4273_v14, %v5545_v20 }
 0x150   : >> { %1248 = vadd.xlane.f32.xlu2 %v4265_v56  ;;  %vm787_vm13 = vcmp.eq.s32.totalorder %v4273_v14, %v5544_v21  ;;  %v1319_v37 = vadd.f32 %v1318_v29, %v1053_v8  ;;  %vm788_vm0 = vcmp.eq.s32.totalorder %v4273_v14, %v5543_v22  ;;  %v4470_v56 = vadd.f32 %v1300_v38, %v1037_v10 }
 0x151   : >> { %v574_v51 = vpop.permute.xlu1 %573  ;;  %v1370_v45 = vadd.f32 %v1369_v12, %v1098_v5  ;;  %v1054_v62 = vsel %vm781_vm7, %v3992_v57, 0.0  ;;  %v1055_v35 = vsel %vm782_vm8, %v3995_v58, 0.0  ;;  %v1334_v10 = vadd.f32 %v1333_v48, %v4360_v23 }
 0x152   : >> { %vm797_vm4 = vcmp.eq.s32.totalorder %v574_v51, %v5542_v11  ;;  %vm798_vm15 = vcmp.eq.s32.totalorder %v574_v51, %v5549_v16  ;;  %1320 = vadd.xlane.f32.xlu0 %v1319_v37  ;;  %vm799_vm14 = vcmp.eq.s32.totalorder %v574_v51, %v5548_v17  ;;  %vm800_vm1 = vcmp.eq.s32.totalorder %v574_v51, %v5547_v18 }
 0x153   : >> { %v1070_v46 = vsel %vm797_vm4, %v3992_v57, 0.0  ;;  %v1071_v50 = vsel %vm798_vm15, %v3995_v58, 0.0  ;;  %vm801_vm5 = vcmp.eq.s32.totalorder %v574_v51, %v5546_v19  ;;  %vm802_vm2 = vcmp.eq.s32.totalorder %v574_v51, %v5545_v20 }
 0x154   : >> { %v1056_v7 = vsel %vm783_vm9, %v4000_v59, 0.0  ;;  %vm803_vm3 = vcmp.eq.s32.totalorder %v574_v51, %v5544_v21  ;;  %v1340_v24 = vadd.f32 %v1071_v50, %v1070_v46  ;;  %v1057_v49 = vsel %vm784_vm10, %v4006_v9, 0.0 }
 0x155   : >> { %v1058_v30 = vsel %vm785_vm11, %v4012_v53, 0.0  ;;  %vm804_vm6 = vcmp.eq.s32.totalorder %v574_v51, %v5543_v22  ;;  %v1072_v23 = vsel %vm799_vm14, %v4000_v59, 0.0  ;;  %v1073_v63 = vsel %vm800_vm1, %v4006_v9, 0.0 }
 0x156   : >> { %v1322_v27 = vadd.f32 %v1055_v35, %v1054_v62  ;;  %v1074_v8 = vsel %vm801_vm5, %v4012_v53, 0.0  ;;  %v1075_v61 = vsel %vm802_vm2, %v4021_v4, 0.0  ;;  %v1341_v54 = vadd.f32 %v1340_v24, %v1072_v23 }
 0x157   : >> { %v1371_v28 = vadd.f32 %v1370_v45, %v1099_v3  ;;  %v1335_v5 = vadd.f32 %v1334_v10, %v4369_v25  ;;  %vm845_vm7 = vcmp.eq.s32.totalorder %v613_v34, %v5542_v11  ;;  %vm846_vm8 = vcmp.eq.s32.totalorder %v613_v34, %v5549_v16 }
 0x158   : >> { %1257 = vadd.xlane.f32.xlu2 %v4093_v15  ;;  %v1323_v38 = vadd.f32 %v1322_v27, %v1056_v7  ;;  %v1076_v12 = vsel %vm803_vm3, %v4028_v2, 0.0  ;;  %v1077_v15 = vsel %vm804_vm6, %v4032_v60, 0.0  ;;  %v1342_v29 = vadd.f32 %v1341_v54, %v1073_v63 }
 0x159   : >> { %1239 = vadd.xlane.f32.xlu1 %v4211_v6  ;;  %vm847_vm9 = vcmp.eq.s32.totalorder %v613_v34, %v5548_v17  ;;  %v1059_v6 = vsel %vm786_vm12, %v4021_v4, 0.0  ;;  %v1060_v25 = vsel %vm787_vm13, %v4028_v2, 0.0  ;;  %v1061_v3 = vsel %vm788_vm0, %v4032_v60, 0.0  ;;  %v4526_v48 = vpop.permute.xlu1 %586 }
 0x15a   : >> { %v1324_v51 = vadd.f32 %v1323_v38, %v1057_v49  ;;  %v1343_v37 = vadd.f32 %v1342_v29, %v1074_v8  ;;  %vm848_vm10 = vcmp.eq.s32.totalorder %v613_v34, %v5547_v18  ;;  %v1118_v45 = vsel %vm845_vm7, %v3992_v57, 0.0 }
 0x15b   : >> { %v1119_v62 = vsel %vm846_vm8, %v3995_v58, 0.0  ;;  %v1372_v35 = vadd.f32 %v1371_v28, %v4445_v1  ;;  %v1336_v46 = vadd.f32 %v1335_v5, %v4375_v31  ;;  %v1120_v10 = vsel %vm847_vm9, %v4000_v59, 0.0 }
 0x15c   : >> { %v1325_v50 = vadd.f32 %v1324_v51, %v1058_v30  ;;  %v1344_v7 = vadd.f32 %v1343_v37, %v1075_v61  ;;  %vm849_vm11 = vcmp.eq.s32.totalorder %v613_v34, %v5546_v19  ;;  %vm850_vm12 = vcmp.eq.s32.totalorder %v613_v34, %v5545_v20 }
 0x15d   : >> { %v1394_v14 = vadd.f32 %v1119_v62, %v1118_v45  ;;  %v1121_v49 = vsel %vm848_vm10, %v4006_v9, 0.0  ;;  %vm813_vm13 = vcmp.eq.s32.totalorder %v4526_v48, %v5542_v11  ;;  %vm814_vm4 = vcmp.eq.s32.totalorder %v4526_v48, %v5549_v16 }
 0x15e   : >> { %v1326_v24 = vadd.f32 %v1325_v50, %v1059_v6  ;;  %v1345_v31 = vadd.f32 %v1344_v7, %v1076_v12  ;;  %vm851_vm15 = vcmp.eq.s32.totalorder %v613_v34, %v5544_v21  ;;  %vm852_vm0 = vcmp.eq.s32.totalorder %v613_v34, %v5543_v22 }
 0x15f   : >> { %v1395_v1 = vadd.f32 %v1394_v14, %v1120_v10  ;;  %v1373_v30 = vadd.f32 %v1372_v35, %v4448_v26  ;;  %v4547_v23 = vadd.f32 %v1336_v46, %v4384_v32  ;;  %v1122_v27 = vsel %vm849_vm11, %v4012_v53, 0.0 }
 0x160   : >> { %1284 = vadd.xlane.f32.xlu2 %v4230_v52  ;;  %v1327_v63 = vadd.f32 %v1326_v24, %v1060_v25  ;;  %v1346_v8 = vadd.f32 %v1345_v31, %v1077_v15  ;;  %v1086_v61 = vsel %vm813_vm13, %v3992_v57, 0.0  ;;  %v1087_v54 = vsel %vm814_vm4, %v3995_v58, 0.0 }
 0x161   : >> { %1275 = vadd.xlane.f32.xlu1 %v4439_v13  ;;  %v1396_v52 = vadd.f32 %v1395_v1, %v1121_v49  ;;  %v1123_v13 = vsel %vm850_vm12, %v4021_v4, 0.0  ;;  %v1124_v26 = vsel %vm851_vm15, %v4028_v2, 0.0  ;;  %v1125_v32 = vsel %vm852_vm0, %v4032_v60, 0.0 }
 0x162   : >> { %vm815_vm14 = vcmp.eq.s32.totalorder %v4526_v48, %v5548_v17  ;;  %1347 = vadd.xlane.f32.xlu0 %v1346_v8  ;;  %vm816_vm1 = vcmp.eq.s32.totalorder %v4526_v48, %v5547_v18  ;;  %vm817_vm5 = vcmp.eq.s32.totalorder %v4526_v48, %v5546_v19  ;;  %vm818_vm2 = vcmp.eq.s32.totalorder %v4526_v48, %v5545_v20 }
 0x163   : >> { %v1397_v28 = vadd.f32 %v1396_v52, %v1122_v27  ;;  %vm819_vm3 = vcmp.eq.s32.totalorder %v4526_v48, %v5544_v21  ;;  %v1358_v34 = vadd.f32 %v1087_v54, %v1086_v61  ;;  %vm805_vm6 = vcmp.eq.s32.totalorder %v4327_v55, %v5542_v11 }
 0x164   : >> { %vm806_vm7 = vcmp.eq.s32.totalorder %v4327_v55, %v5549_v16  ;;  %v1328_v5 = vadd.f32 %v1327_v63, %v1061_v3  ;;  %vm820_vm8 = vcmp.eq.s32.totalorder %v4526_v48, %v5543_v22  ;;  %v1088_v38 = vsel %vm815_vm14, %v4000_v59, 0.0 }
 0x165   : >> { %vm807_vm9 = vcmp.eq.s32.totalorder %v4327_v55, %v5548_v17  ;;  %v1398_v12 = vadd.f32 %v1397_v28, %v1123_v13  ;;  %v1089_v15 = vsel %vm816_vm1, %v4006_v9, 0.0  ;;  %v1359_v29 = vadd.f32 %v1358_v34, %v1088_v38 }
 0x166   : >> { %v1078_v6 = vsel %vm805_vm6, %v3992_v57, 0.0  ;;  %v1090_v25 = vsel %vm817_vm5, %v4012_v53, 0.0  ;;  %v1091_v3 = vsel %vm818_vm2, %v4021_v4, 0.0  ;;  %vm808_vm10 = vcmp.eq.s32.totalorder %v4327_v55, %v5547_v18 }
 0x167   : >> { %v1079_v51 = vsel %vm806_vm7, %v3995_v58, 0.0  ;;  %v1092_v37 = vsel %vm819_vm3, %v4028_v2, 0.0  ;;  %v1360_v45 = vadd.f32 %v1359_v29, %v1089_v15  ;;  %vm809_vm11 = vcmp.eq.s32.totalorder %v4327_v55, %v5546_v19  ;;  %v4659_v29 = vpop.permute.xlu0 %599 }
 0x168   : >> { %1311 = vadd.xlane.f32.xlu2 %v4392_v0  ;;  %v1080_v0 = vsel %vm807_vm9, %v4000_v59, 0.0  ;;  %vm810_vm12 = vcmp.eq.s32.totalorder %v4327_v55, %v5545_v20  ;;  %vm811_vm13 = vcmp.eq.s32.totalorder %v4327_v55, %v5544_v21  ;;  %v1349_v62 = vadd.f32 %v1079_v51, %v1078_v6 }
 0x169   : >> { %1302 = vadd.xlane.f32.xlu1 %v4470_v56  ;;  %vm869_vm4 = vcmp.eq.s32.totalorder %v4188_v47, %v5542_v11  ;;  %v1399_v56 = vadd.f32 %v1398_v12, %v1124_v26  ;;  %v1361_v35 = vadd.f32 %v1360_v45, %v1090_v25  ;;  %v1081_v46 = vsel %vm808_vm10, %v4006_v9, 0.0  ;;  %v4611_v7 = vpop.permute.xlu1 %605 }
 0x16a   : >> { %vm870_vm15 = vcmp.eq.s32.totalorder %v4188_v47, %v5549_v16  ;;  %1374 = vadd.xlane.f32.xlu0 %v1373_v30  ;;  %v1093_v50 = vsel %vm820_vm8, %v4032_v60, 0.0  ;;  %vm812_vm0 = vcmp.eq.s32.totalorder %v4327_v55, %v5543_v22  ;;  %v1350_v10 = vadd.f32 %v1349_v62, %v1080_v0  ;;  %v626_v62 = vpop.permute.xlu2 %625 }
 0x16b   : >> { %vm871_vm14 = vcmp.eq.s32.totalorder %v4188_v47, %v5548_v17  ;;  %v1362_v14 = vadd.f32 %v1361_v35, %v1091_v3  ;;  %v1082_v24 = vsel %vm809_vm11, %v4012_v53, 0.0  ;;  %v1142_v49 = vsel %vm869_vm4, %v3992_v57, 0.0 }
 0x16c   : >> { %v1143_v48 = vsel %vm870_vm15, %v3995_v58, 0.0  ;;  %v1083_v31 = vsel %vm810_vm12, %v4021_v4, 0.0  ;;  %v1084_v1 = vsel %vm811_vm13, %v4028_v2, 0.0  ;;  %v1351_v30 = vadd.f32 %v1350_v10, %v1081_v46 }
 0x16d   : >> { %vm872_vm1 = vcmp.eq.s32.totalorder %v4188_v47, %v5547_v18  ;;  %v1400_v63 = vadd.f32 %v1399_v56, %v1125_v32  ;;  %vm873_vm5 = vcmp.eq.s32.totalorder %v4188_v47, %v5546_v19  ;;  %vm874_vm2 = vcmp.eq.s32.totalorder %v4188_v47, %v5545_v20 }
 0x16e   : >> { %v1144_v27 = vsel %vm871_vm14, %v4000_v59, 0.0  ;;  %v1352_v8 = vadd.f32 %v1351_v30, %v1082_v24  ;;  %v1421_v52 = vadd.f32 %v1143_v48, %v1142_v49  ;;  %vm837_vm3 = vcmp.eq.s32.totalorder %v4611_v7, %v5542_v11 }
 0x16f   : >> { %vm838_vm6 = vcmp.eq.s32.totalorder %v4611_v7, %v5549_v16  ;;  %v1363_v61 = vadd.f32 %v1362_v14, %v1092_v37  ;;  %vm875_vm7 = vcmp.eq.s32.totalorder %v4188_v47, %v5544_v21  ;;  %vm876_vm8 = vcmp.eq.s32.totalorder %v4188_v47, %v5543_v22 }
 0x170   : >> { %1338 = vadd.xlane.f32.xlu2 %v4547_v23  ;;  %v1145_v54 = vsel %vm872_vm1, %v4006_v9, 0.0  ;;  %v1085_v23 = vsel %vm812_vm0, %v4032_v60, 0.0  ;;  %v1353_v13 = vadd.f32 %v1352_v8, %v1083_v31  ;;  %v1146_v26 = vsel %vm873_vm5, %v4012_v53, 0.0 }
 0x171   : >> { %1329 = vadd.xlane.f32.xlu1 %v1328_v5  ;;  %v1422_v32 = vadd.f32 %v1421_v52, %v1144_v27  ;;  %v1147_v28 = vsel %vm874_vm2, %v4021_v4, 0.0  ;;  %vm839_vm9 = vcmp.eq.s32.totalorder %v4611_v7, %v5548_v17  ;;  %v1110_v34 = vsel %vm837_vm3, %v3992_v57, 0.0 }
 0x172   : >> { %v1111_v5 = vsel %vm838_vm6, %v3995_v58, 0.0  ;;  %1401 = vadd.xlane.f32.xlu0 %v1400_v63  ;;  %v1354_v38 = vadd.f32 %v1353_v13, %v1084_v1  ;;  %v1148_v55 = vsel %vm875_vm7, %v4028_v2, 0.0  ;;  %v1149_v12 = vsel %vm876_vm8, %v4032_v60, 0.0 }
 0x173   : >> { %v1423_v15 = vadd.f32 %v1422_v32, %v1145_v54  ;;  %v1364_v6 = vadd.f32 %v1363_v61, %v1093_v50  ;;  %vm840_vm10 = vcmp.eq.s32.totalorder %v4611_v7, %v5547_v18  ;;  %vm841_vm11 = vcmp.eq.s32.totalorder %v4611_v7, %v5546_v19  ;;  %v4712_v54 = vpop.permute.xlu1 %618 }
 0x174   : >> { %v1385_v47 = vadd.f32 %v1111_v5, %v1110_v34  ;;  %v1112_v3 = vsel %vm839_vm9, %v4000_v59, 0.0  ;;  %vm829_vm12 = vcmp.eq.s32.totalorder %v4659_v29, %v5542_v11  ;;  %vm830_vm13 = vcmp.eq.s32.totalorder %v4659_v29, %v5549_v16 }
 0x175   : >> { %v1424_v25 = vadd.f32 %v1423_v15, %v1146_v26  ;;  %v1355_v51 = vadd.f32 %v1354_v38, %v1085_v23  ;;  %vm842_vm4 = vcmp.eq.s32.totalorder %v4611_v7, %v5545_v20  ;;  %vm831_vm15 = vcmp.eq.s32.totalorder %v4659_v29, %v5548_v17 }
 0x176   : >> { %v1386_v37 = vadd.f32 %v1385_v47, %v1112_v3  ;;  %vm843_vm0 = vcmp.eq.s32.totalorder %v4611_v7, %v5544_v21  ;;  %vm844_vm14 = vcmp.eq.s32.totalorder %v4611_v7, %v5543_v22  ;;  %v1113_v0 = vsel %vm840_vm10, %v4006_v9, 0.0 }
 0x177   : >> { %v1425_v45 = vadd.f32 %v1424_v25, %v1147_v28  ;;  %vm832_vm1 = vcmp.eq.s32.totalorder %v4659_v29, %v5547_v18  ;;  %v1102_v35 = vsel %vm829_vm12, %v3992_v57, 0.0  ;;  %v1103_v46 = vsel %vm830_vm13, %v3995_v58, 0.0 }
 0x178   : >> { %1365 = vadd.xlane.f32.xlu2 %v1364_v6  ;;  %v1387_v56 = vadd.f32 %v1386_v37, %v1113_v0  ;;  %v1114_v10 = vsel %vm841_vm11, %v4012_v53, 0.0  ;;  %v1115_v14 = vsel %vm842_vm4, %v4021_v4, 0.0  ;;  %v1104_v24 = vsel %vm831_vm15, %v4000_v59, 0.0 }
 0x179   : >> { %1356 = vadd.xlane.f32.xlu1 %v1355_v51  ;;  %v1426_v50 = vadd.f32 %v1425_v45, %v1148_v55  ;;  %vm833_vm5 = vcmp.eq.s32.totalorder %v4659_v29, %v5546_v19  ;;  %vm834_vm2 = vcmp.eq.s32.totalorder %v4659_v29, %v5545_v20  ;;  %v1376_v48 = vadd.f32 %v1103_v46, %v1102_v35 }
 0x17a   : >> { %v1388_v49 = vadd.f32 %v1387_v56, %v1114_v10  ;;  %v1105_v1 = vsel %vm832_vm1, %v4006_v9, 0.0  ;;  %vm861_vm3 = vcmp.eq.s32.totalorder %v626_v62, %v5542_v11  ;;  %vm862_vm6 = vcmp.eq.s32.totalorder %v626_v62, %v5549_v16  ;;  %v645_v56 = vpop.permute.xlu2 %644  ;;  %v4749_v10 = vpop.permute.xlu0 %664 }
 0x17b   : >> { %v1427_v31 = vadd.f32 %v1426_v50, %v1149_v12  ;;  %vm835_vm7 = vcmp.eq.s32.totalorder %v4659_v29, %v5544_v21  ;;  %v1377_v63 = vadd.f32 %v1376_v48, %v1104_v24  ;;  %vm863_vm8 = vcmp.eq.s32.totalorder %v626_v62, %v5548_v17 }
 0x17c   : >> { %v1389_v30 = vadd.f32 %v1388_v49, %v1115_v14  ;;  %v1116_v27 = vsel %vm843_vm0, %v4028_v2, 0.0  ;;  %v1117_v8 = vsel %vm844_vm14, %v4032_v60, 0.0  ;;  %v1106_v52 = vsel %vm833_vm5, %v4012_v53, 0.0 }
 0x17d   : >> { %1428 = vadd.xlane.f32.xlu0 %v1427_v31  ;;  %v1134_v61 = vsel %vm861_vm3, %v3992_v57, 0.0  ;;  %v1378_v13 = vadd.f32 %v1377_v63, %v1105_v1  ;;  %vm864_vm9 = vcmp.eq.s32.totalorder %v626_v62, %v5547_v18  ;;  %v1135_v26 = vsel %vm862_vm6, %v3995_v58, 0.0 }
 0x17e   : >> { %v1390_v23 = vadd.f32 %v1389_v30, %v1116_v27  ;;  %vm836_vm10 = vcmp.eq.s32.totalorder %v4659_v29, %v5543_v22  ;;  %v1107_v7 = vsel %vm834_vm2, %v4021_v4, 0.0  ;;  %v1108_v32 = vsel %vm835_vm7, %v4028_v2, 0.0 }
 0x17f   : >> { %v1136_v28 = vsel %vm863_vm8, %v4000_v59, 0.0  ;;  %v1379_v5 = vadd.f32 %v1378_v13, %v1106_v52  ;;  %vm865_vm11 = vcmp.eq.s32.totalorder %v626_v62, %v5546_v19  ;;  %v1412_v38 = vadd.f32 %v1135_v26, %v1134_v61 }
 0x180   : >> { %v1391_v34 = vadd.f32 %v1390_v23, %v1117_v8  ;;  %vm866_vm12 = vcmp.eq.s32.totalorder %v626_v62, %v5545_v20  ;;  %v1137_v55 = vsel %vm864_vm9, %v4006_v9, 0.0  ;;  %vm853_vm13 = vcmp.eq.s32.totalorder %v4712_v54, %v5542_v11 }
 0x181   : >> { %vm854_vm4 = vcmp.eq.s32.totalorder %v4712_v54, %v5549_v16  ;;  %v1380_v12 = vadd.f32 %v1379_v5, %v1107_v7  ;;  %vm867_vm15 = vcmp.eq.s32.totalorder %v626_v62, %v5544_v21  ;;  %vm868_vm0 = vcmp.eq.s32.totalorder %v626_v62, %v5543_v22  ;;  %v4763_v31 = vpop.permute.xlu1 %638 }
 0x182   : >> { %1392 = vadd.xlane.f32.xlu2 %v1391_v34  ;;  %v1413_v15 = vadd.f32 %v1412_v38, %v1136_v28  ;;  %v1109_v6 = vsel %vm836_vm10, %v4032_v60, 0.0  ;;  %v1138_v47 = vsel %vm865_vm11, %v4012_v53, 0.0  ;;  %v1126_v25 = vsel %vm853_vm13, %v3992_v57, 0.0 }
 0x183   : >> { %v1127_v3 = vsel %vm854_vm4, %v3995_v58, 0.0  ;;  %v1381_v51 = vadd.f32 %v1380_v12, %v1108_v32  ;;  %vm855_vm14 = vcmp.eq.s32.totalorder %v4712_v54, %v5548_v17  ;;  %v1139_v45 = vsel %vm866_vm12, %v4021_v4, 0.0 }
 0x184   : >> { %v1414_v37 = vadd.f32 %v1413_v15, %v1137_v55  ;;  %v1140_v0 = vsel %vm867_vm15, %v4028_v2, 0.0  ;;  %v1141_v29 = vsel %vm868_vm0, %v4032_v60, 0.0  ;;  %vm856_vm1 = vcmp.eq.s32.totalorder %v4712_v54, %v5547_v18 }
 0x185   : >> { %v1382_v35 = vadd.f32 %v1381_v51, %v1109_v6  ;;  %v1403_v50 = vadd.f32 %v1127_v3, %v1126_v25  ;;  %vm857_vm5 = vcmp.eq.s32.totalorder %v4712_v54, %v5546_v19  ;;  %v1128_v14 = vsel %vm855_vm14, %v4000_v59, 0.0 }
 0x186   : >> { %v1415_v46 = vadd.f32 %v1414_v37, %v1138_v47  ;;  %vm885_vm2 = vcmp.eq.s32.totalorder %v645_v56, %v5542_v11  ;;  %vm886_vm3 = vcmp.eq.s32.totalorder %v645_v56, %v5549_v16  ;;  %vm858_vm6 = vcmp.eq.s32.totalorder %v4712_v54, %v5545_v20 }
 0x187   : >> { %1383 = vadd.xlane.f32.xlu1 %v1382_v35  ;;  %v1404_v24 = vadd.f32 %v1403_v50, %v1128_v14  ;;  %vm887_vm7 = vcmp.eq.s32.totalorder %v645_v56, %v5548_v17  ;;  %vm859_vm8 = vcmp.eq.s32.totalorder %v4712_v54, %v5544_v21  ;;  %v1129_v49 = vsel %vm856_vm1, %v4006_v9, 0.0 }
 0x188   : >> { %v1416_v62 = vadd.f32 %v1415_v46, %v1139_v45  ;;  %v1158_v48 = vsel %vm885_vm2, %v3992_v57, 0.0  ;;  %vm888_vm9 = vcmp.eq.s32.totalorder %v645_v56, %v5547_v18  ;;  %v1159_v63 = vsel %vm886_vm3, %v3995_v58, 0.0 }
 0x189   : >> { %v1405_v30 = vadd.f32 %v1404_v24, %v1129_v49  ;;  %vm860_vm10 = vcmp.eq.s32.totalorder %v4712_v54, %v5543_v22  ;;  %v1130_v27 = vsel %vm857_vm5, %v4012_v53, 0.0  ;;  %v1131_v8 = vsel %vm858_vm6, %v4021_v4, 0.0  ;;  %v4817_v35 = vpop.permute.xlu1 %651 }
 0x18a   : >> { %v1417_v1 = vadd.f32 %v1416_v62, %v1140_v0  ;;  %v1160_v52 = vsel %vm887_vm7, %v4000_v59, 0.0  ;;  %vm889_vm11 = vcmp.eq.s32.totalorder %v645_v56, %v5546_v19  ;;  %v1439_v13 = vadd.f32 %v1159_v63, %v1158_v48  ;;  %v4832_v63 = vpop.permute.xlu2 %657 }
 0x18b   : >> { %v1406_v23 = vadd.f32 %v1405_v30, %v1130_v27  ;;  %v1161_v26 = vsel %vm888_vm9, %v4006_v9, 0.0  ;;  %vm877_vm12 = vcmp.eq.s32.totalorder %v4763_v31, %v5542_v11  ;;  %vm878_vm13 = vcmp.eq.s32.totalorder %v4763_v31, %v5549_v16 }
 0x18c   : >> { %v1418_v61 = vadd.f32 %v1417_v1, %v1141_v29  ;;  %vm890_vm4 = vcmp.eq.s32.totalorder %v645_v56, %v5545_v20  ;;  %vm891_vm15 = vcmp.eq.s32.totalorder %v645_v56, %v5544_v21  ;;  %v1440_v32 = vadd.f32 %v1439_v13, %v1160_v52 }
 0x18d   : >> { %v1407_v7 = vadd.f32 %v1406_v23, %v1131_v8  ;;  %v1132_v28 = vsel %vm859_vm8, %v4028_v2, 0.0  ;;  %v1162_v5 = vsel %vm889_vm11, %v4012_v53, 0.0  ;;  %v1150_v38 = vsel %vm877_vm12, %v3992_v57, 0.0 }
 0x18e   : >> { %1419 = vadd.xlane.f32.xlu2 %v1418_v61  ;;  %v1231_v34 = vpop.xlane.xlu0 %1230  ;;  %v1151_v55 = vsel %vm878_vm13, %v3995_v58, 0.0  ;;  %v1441_v6 = vadd.f32 %v1440_v32, %v1161_v26  ;;  %vm879_vm0 = vcmp.eq.s32.totalorder %v4763_v31, %v5548_v17  ;;  %v1133_v47 = vsel %vm860_vm10, %v4032_v60, 0.0 }
 0x18f   : >> { %v1408_v12 = vadd.f32 %v1407_v7, %v1132_v28  ;;  %v4791_v43 = vadd.f32 %v3259_v43, %v1231_v34   ;;  %vm892_vm14 = vcmp.eq.s32.totalorder %v645_v56, %v5543_v22  ;;  %v1163_v25 = vsel %vm890_vm4, %v4021_v4, 0.0 }
 0x190   : >> { %v1164_v3 = vsel %vm891_vm15, %v4028_v2, 0.0  ;;  %v1442_v37 = vadd.f32 %v1441_v6, %v1162_v5  ;;  %vm880_vm1 = vcmp.eq.s32.totalorder %v4763_v31, %v5547_v18  ;;  %v1152_v45 = vsel %vm879_vm0, %v4000_v59, 0.0 }
 0x191   : >> { %v5592_v15 = vmov %v4791_v43  ;;  %v1409_v51 = vadd.f32 %v1408_v12, %v1133_v47  ;;  %v1430_v43 = vadd.f32 %v1151_v55, %v1150_v38  ;;  %vm909_vm5 = vcmp.eq.s32.totalorder %v4749_v10, %v5542_v11 }
 0x192   : >> { %vm910_vm2 = vcmp.eq.s32.totalorder %v4749_v10, %v5549_v16  ;;  %v1165_v54 = vsel %vm892_vm14, %v4032_v60, 0.0  ;;  %v1443_v0 = vadd.f32 %v1442_v37, %v1163_v25  ;;  %vm881_vm3 = vcmp.eq.s32.totalorder %v4763_v31, %v5546_v19 }
 0x193   : >> { %1410 = vadd.xlane.f32.xlu1 %v1409_v51  ;;  %v1431_v29 = vadd.f32 %v1430_v43, %v1152_v45  ;;  %vm882_vm6 = vcmp.eq.s32.totalorder %v4763_v31, %v5545_v20  ;;  %v1153_v56 = vsel %vm880_vm1, %v4006_v9, 0.0  ;;  %vm911_vm7 = vcmp.eq.s32.totalorder %v4749_v10, %v5548_v17 }
 0x194   : >> { %v1444_v46 = vadd.f32 %v1443_v0, %v1164_v3  ;;  %v1182_v14 = vsel %vm909_vm5, %v3992_v57, 0.0  ;;  %v1183_v62 = vsel %vm910_vm2, %v3995_v58, 0.0  ;;  %vm883_vm8 = vcmp.eq.s32.totalorder %v4763_v31, %v5544_v21  ;;  %v4878_v3 = vpop.permute.xlu2 %677 }
 0x195   : >> { %v1432_v50 = vadd.f32 %v1431_v29, %v1153_v56  ;;  %v1154_v24 = vsel %vm881_vm3, %v4012_v53, 0.0  ;;  %vm912_vm9 = vcmp.eq.s32.totalorder %v4749_v10, %v5547_v18  ;;  %vm913_vm10 = vcmp.eq.s32.totalorder %v4749_v10, %v5546_v19 }
 0x196   : >> { %v1267_v49 = vpop.xlane.xlu0 %1266  ;;  %v1445_v48 = vadd.f32 %v1444_v46, %v1165_v54  ;;  %v1184_v30 = vsel %vm911_vm7, %v4000_v59, 0.0  ;;  %v1155_v27 = vsel %vm882_vm6, %v4021_v4, 0.0  ;;  %v1466_v52 = vadd.f32 %v1183_v62, %v1182_v14 }
 0x197   : >> { %v1433_v1 = vadd.f32 %v1432_v50, %v1154_v24  ;;  %v4829_v39 = vadd.f32 %v3243_v39, %v1267_v49   ;;  %vm893_vm11 = vcmp.eq.s32.totalorder %v4817_v35, %v5542_v11  ;;  %vm894_vm12 = vcmp.eq.s32.totalorder %v4817_v35, %v5549_v16 }
 0x198   : >> { %1446 = vadd.xlane.f32.xlu2 %v1445_v48  ;;  %vm884_vm13 = vcmp.eq.s32.totalorder %v4763_v31, %v5543_v22  ;;  %vm914_vm4 = vcmp.eq.s32.totalorder %v4749_v10, %v5545_v20  ;;  %v1185_v61 = vsel %vm912_vm9, %v4006_v9, 0.0  ;;  %v1156_v23 = vsel %vm883_vm8, %v4028_v2, 0.0 }
 0x199   : >> { %v5593_v8 = vmov %v4829_v39  ;;  %v1434_v39 = vadd.f32 %v1433_v1, %v1155_v27  ;;  %vm915_vm15 = vcmp.eq.s32.totalorder %v4749_v10, %v5544_v21  ;;  %v1186_v13 = vsel %vm913_vm10, %v4012_v53, 0.0  ;;  %v4889_v29 = vpop.permute.xlu1 %670 }
 0x19a   : >> { %v1467_v26 = vadd.f32 %v1466_v52, %v1184_v30  ;;  %vm895_vm0 = vcmp.eq.s32.totalorder %v4817_v35, %v5548_v17  ;;  %v1166_v32 = vsel %vm893_vm11, %v3992_v57, 0.0  ;;  %v1167_v28 = vsel %vm894_vm12, %v3995_v58, 0.0 }
 0x19b   : >> { %v1435_v7 = vadd.f32 %v1434_v39, %v1156_v23  ;;  %v1157_v31 = vsel %vm884_vm13, %v4032_v60, 0.0  ;;  %vm916_vm14 = vcmp.eq.s32.totalorder %v4749_v10, %v5543_v22  ;;  %v1187_v34 = vsel %vm914_vm4, %v4021_v4, 0.0 }
 0x19c   : >> { %v1468_v5 = vadd.f32 %v1467_v26, %v1185_v61  ;;  %v1188_v55 = vsel %vm915_vm15, %v4028_v2, 0.0  ;;  %vm896_vm1 = vcmp.eq.s32.totalorder %v4817_v35, %v5547_v18  ;;  %v1448_v12 = vadd.f32 %v1167_v28, %v1166_v32 }
 0x19d   : >> { %v1436_v38 = vadd.f32 %v1435_v7, %v1157_v31  ;;  %v1168_v47 = vsel %vm895_vm0, %v4000_v59, 0.0  ;;  %vm901_vm5 = vcmp.eq.s32.totalorder %v4832_v63, %v5542_v11  ;;  %vm902_vm2 = vcmp.eq.s32.totalorder %v4832_v63, %v5549_v16 }
 0x19e   : >> { %v1469_v6 = vadd.f32 %v1468_v5, %v1186_v13  ;;  %v1189_v10 = vsel %vm916_vm14, %v4032_v60, 0.0  ;;  %vm897_vm3 = vcmp.eq.s32.totalorder %v4817_v35, %v5546_v19  ;;  %v1449_v25 = vadd.f32 %v1448_v12, %v1168_v47 }
 0x19f   : >> { %1437 = vadd.xlane.f32.xlu1 %v1436_v38  ;;  %vm903_vm6 = vcmp.eq.s32.totalorder %v4832_v63, %v5548_v17  ;;  %vm898_vm7 = vcmp.eq.s32.totalorder %v4817_v35, %v5545_v20  ;;  %v1169_v37 = vsel %vm896_vm1, %v4006_v9, 0.0  ;;  %v1174_v43 = vsel %vm901_vm5, %v3992_v57, 0.0 }
 0x1a0   : >> { %v1470_v51 = vadd.f32 %v1469_v6, %v1187_v34  ;;  %vm899_vm8 = vcmp.eq.s32.totalorder %v4817_v35, %v5544_v21  ;;  %v1450_v45 = vadd.f32 %v1449_v25, %v1169_v37  ;;  %vm904_vm9 = vcmp.eq.s32.totalorder %v4832_v63, %v5547_v18 }
 0x1a1   : >> { %v1175_v54 = vsel %vm902_vm2, %v3995_v58, 0.0  ;;  %vm900_vm10 = vcmp.eq.s32.totalorder %v4817_v35, %v5543_v22  ;;  %v1170_v56 = vsel %vm897_vm3, %v4012_v53, 0.0  ;;  %v1176_v46 = vsel %vm903_vm6, %v4000_v59, 0.0 }
 0x1a2   : >> { %v1471_v0 = vadd.f32 %v1470_v51, %v1188_v55  ;;  %v1451_v50 = vadd.f32 %v1450_v45, %v1170_v56  ;;  %vm905_vm11 = vcmp.eq.s32.totalorder %v4832_v63, %v5546_v19  ;;  %v1457_v14 = vadd.f32 %v1175_v54, %v1174_v43  ;;  %v4941_v55 = vpop.permute.xlu1 %683 }
 0x1a3   : >> { %vm925_vm12 = vcmp.eq.s32.totalorder %v4878_v3, %v5542_v11  ;;  %v1171_v24 = vsel %vm898_vm7, %v4021_v4, 0.0  ;;  %v1177_v49 = vsel %vm904_vm9, %v4006_v9, 0.0  ;;  %vm926_vm13 = vcmp.eq.s32.totalorder %v4878_v3, %v5549_v16 }
 0x1a4   : >> { %v1472_v62 = vadd.f32 %v1471_v0, %v1189_v10  ;;  %v1452_v48 = vadd.f32 %v1451_v50, %v1171_v24  ;;  %vm906_vm4 = vcmp.eq.s32.totalorder %v4832_v63, %v5545_v20  ;;  %v1458_v1 = vadd.f32 %v1457_v14, %v1176_v46 }
 0x1a5   : >> { %vm927_vm15 = vcmp.eq.s32.totalorder %v4878_v3, %v5548_v17  ;;  %v1172_v30 = vsel %vm899_vm8, %v4028_v2, 0.0  ;;  %v1178_v27 = vsel %vm905_vm11, %v4012_v53, 0.0  ;;  %v1198_v52 = vsel %vm925_vm12, %v3992_v57, 0.0 }
 0x1a6   : >> { %1473 = vadd.xlane.f32.xlu2 %v1472_v62  ;;  %v1199_v39 = vsel %vm926_vm13, %v3995_v58, 0.0  ;;  %v1453_v61 = vadd.f32 %v1452_v48, %v1172_v30  ;;  %vm907_vm0 = vcmp.eq.s32.totalorder %v4832_v63, %v5544_v21  ;;  %v1459_v23 = vadd.f32 %v1458_v1, %v1177_v49 }
 0x1a7   : >> { %vm928_vm14 = vcmp.eq.s32.totalorder %v4878_v3, %v5547_v18  ;;  %v1173_v13 = vsel %vm900_vm10, %v4032_v60, 0.0  ;;  %v1179_v26 = vsel %vm906_vm4, %v4021_v4, 0.0  ;;  %vm929_vm1 = vcmp.eq.s32.totalorder %v4878_v3, %v5546_v19 }
 0x1a8   : >> { %v1200_v7 = vsel %vm927_vm15, %v4000_v59, 0.0  ;;  %v1454_v32 = vadd.f32 %v1453_v61, %v1173_v13  ;;  %v1460_v28 = vadd.f32 %v1459_v23, %v1178_v27  ;;  %v1484_v31 = vadd.f32 %v1199_v39, %v1198_v52 }
 0x1a9   : >> { %vm917_vm5 = vcmp.eq.s32.totalorder %v4889_v29, %v5542_v11  ;;  %vm908_vm2 = vcmp.eq.s32.totalorder %v4832_v63, %v5543_v22  ;;  %v1180_v34 = vsel %vm907_vm0, %v4028_v2, 0.0  ;;  %v1201_v35 = vsel %vm928_vm14, %v4006_v9, 0.0 }
 0x1aa   : >> { %vm918_vm3 = vcmp.eq.s32.totalorder %v4889_v29, %v5549_v16  ;;  %1455 = vadd.xlane.f32.xlu0 %v1454_v32  ;;  %v1461_v5 = vadd.f32 %v1460_v28, %v1179_v26  ;;  %vm930_vm6 = vcmp.eq.s32.totalorder %v4878_v3, %v5545_v20  ;;  %v1485_v38 = vadd.f32 %v1484_v31, %v1200_v7 }
 0x1ab   : >> { %vm919_vm7 = vcmp.eq.s32.totalorder %v4889_v29, %v5548_v17  ;;  %v1202_v63 = vsel %vm929_vm1, %v4012_v53, 0.0  ;;  %v1190_v12 = vsel %vm917_vm5, %v3992_v57, 0.0  ;;  %v1191_v6 = vsel %vm918_vm3, %v3995_v58, 0.0 }
 0x1ac   : >> { %v1181_v47 = vsel %vm908_vm2, %v4032_v60, 0.0  ;;  %v1462_v10 = vadd.f32 %v1461_v5, %v1180_v34  ;;  %vm931_vm8 = vcmp.eq.s32.totalorder %v4878_v3, %v5544_v21  ;;  %v1486_v25 = vadd.f32 %v1485_v38, %v1201_v35 }
 0x1ad   : >> { %v1203_v51 = vsel %vm930_vm6, %v4021_v4, 0.0  ;;  %vm920_vm9 = vcmp.eq.s32.totalorder %v4889_v29, %v5547_v18  ;;  %v1192_v37 = vsel %vm919_vm7, %v4000_v59, 0.0  ;;  %v1475_v43 = vadd.f32 %v1191_v6, %v1190_v12 }
 0x1ae   : >> { %v1463_v45 = vadd.f32 %v1462_v10, %v1181_v47  ;;  %v1487_v54 = vadd.f32 %v1486_v25, %v1202_v63  ;;  %vm933_vm10 = vcmp.eq.s32.totalorder %v4941_v55, %v5542_v11  ;;  %vm934_vm11 = vcmp.eq.s32.totalorder %v4941_v55, %v5549_v16 }
 0x1af   : >> { %vm932_vm12 = vcmp.eq.s32.totalorder %v4878_v3, %v5543_v22  ;;  %v1204_v0 = vsel %vm931_vm8, %v4028_v2, 0.0  ;;  %vm921_vm13 = vcmp.eq.s32.totalorder %v4889_v29, %v5546_v19  ;;  %v1476_v56 = vadd.f32 %v1475_v43, %v1192_v37 }
 0x1b0   : >> { %1464 = vadd.xlane.f32.xlu1 %v1463_v45  ;;  %v1488_v46 = vadd.f32 %v1487_v54, %v1203_v51  ;;  %vm922_vm4 = vcmp.eq.s32.totalorder %v4889_v29, %v5545_v20  ;;  %vm923_vm15 = vcmp.eq.s32.totalorder %v4889_v29, %v5544_v21  ;;  %v1193_v50 = vsel %vm920_vm9, %v4006_v9, 0.0  ;;  %v5602_v45 = vld [vmem:[#allocation68_spill] sm:$0xff] }
 0x1b1   : >> { %v1477_v14 = vadd.f32 %v1476_v56, %v1193_v50  ;;  %vm935_vm0 = vcmp.eq.s32.totalorder %v4941_v55, %v5548_v17  ;;  %v1206_v3 = vsel %vm933_vm10, %v3992_v57, 0.0  ;;  %v1207_v62 = vsel %vm934_vm11, %v3995_v58, 0.0  ;;  %v5606_v56 = vld [vmem:[#allocation65_spill] sm:$0xff] }
 0x1b2   : >> { %v1205_v24 = vsel %vm932_vm12, %v4032_v60, 0.0  ;;  %v1489_v49 = vadd.f32 %v1488_v46, %v1204_v0  ;;  %vm924_vm14 = vcmp.eq.s32.totalorder %v4889_v29, %v5543_v22  ;;  %v1194_v48 = vsel %vm921_vm13, %v4012_v53, 0.0  ;;  %v5604_v0 = vld [vmem:[#allocation62_spill] sm:$0xff] }
 0x1b3   : >> { %v1195_v1 = vsel %vm922_vm4, %v4021_v4, 0.0  ;;  %v1478_v30 = vadd.f32 %v1477_v14, %v1194_v48  ;;  %vm936_vm1 = vcmp.eq.s32.totalorder %v4941_v55, %v5547_v18  ;;  %v1493_v27 = vadd.f32 %v1207_v62, %v1206_v3  ;;  %v5608_v14 = vld [vmem:[#allocation66_spill] sm:$0xff]  ;;  %v5610_v62 = vld [vmem:[#allocation59_spill] sm:$0xff] }
 0x1b4   : >> { %v1196_v52 = vsel %vm923_vm15, %v4028_v2, 0.0  ;;  %v1208_v57 = vsel %vm935_vm0, %v4000_v59, 0.0  ;;  %vm937_vm5 = vcmp.eq.s32.totalorder %v4941_v55, %v5546_v19  ;;  %v1490_v23 = vadd.f32 %v1489_v49, %v1205_v24  ;;  %v5612_v24 = vld [vmem:[#allocation63_spill] sm:$0xff] }
 0x1b5   : >> { %v1479_v58 = vadd.f32 %v1478_v30, %v1195_v1  ;;  %v1494_v39 = vadd.f32 %v1493_v27, %v1208_v57  ;;  %v1209_v13 = vsel %vm936_vm1, %v4006_v9, 0.0  ;;  %vm938_vm2 = vcmp.eq.s32.totalorder %v4941_v55, %v5545_v20  ;;  %v5616_v57 = vld [vmem:[#allocation56_spill] sm:$0xff] }
 0x1b6   : >> { %v1197_v59 = vsel %vm924_vm14, %v4032_v60, 0.0  ;;  %v1210_v28 = vsel %vm937_vm5, %v4012_v53, 0.0  ;;  %vm939_vm3 = vcmp.eq.s32.totalorder %v4941_v55, %v5544_v21  ;;  %vm940_vm6 = vcmp.eq.s32.totalorder %v4941_v55, %v5543_v22 }
 0x1b7   : >> { %v1294_v61 = vpop.xlane.xlu0 %1293  ;;  %v1480_v26 = vadd.f32 %v1479_v58, %v1196_v52  ;;  %v1495_v32 = vadd.f32 %v1494_v39, %v1209_v13  ;;  %v1212_v29 = vsel %vm939_vm3, %v4028_v2, 0.0  ;;  %v1213_v53 = vsel %vm940_vm6, %v4032_v60, 0.0  ;;  %v5600_v60 = vld [vmem:[#allocation67_spill] sm:$0xff]  ;;  %v5614_v52 = vld [vmem:[#allocation64_spill] sm:$0xff] }
 0x1b8   : >> { %v4987_v36 = vadd.f32 %v3231_v36, %v1294_v61   ;;  %1491 = vadd.xlane.f32.xlu1 %v1490_v23  ;;  %v5618_v39 = vld [vmem:[#allocation60_spill] sm:$0xff]  ;;  %v5620_v23 = vld [vmem:[#allocation61_spill] sm:$0xff] }
 0x1b9   : >> { %v1481_v34 = vadd.f32 %v1480_v26, %v1197_v59  ;;  %v1496_v9 = vadd.f32 %v1495_v32, %v1210_v28  ;;  %v5622_v26 = vld [vmem:[#allocation53_spill] sm:$0xff] }
 0x1ba   : >> { %v5594_v7 = vmov %v4987_v36  ;;  %v1211_v36 = vsel %vm938_vm2, %v4021_v4, 0.0 }
 0x1bb   : >> { %v1222_v31 = vpop.xlane.xlu2 %1221  ;;  %1482 = vadd.xlane.f32.xlu0 %v1481_v34  ;;  %v1497_v35 = vadd.f32 %v1496_v9, %v1211_v36 }
 0x1bc   : >> { %v4999_v44 = vadd.f32 %v3263_v44, %v1222_v31  }
 0x1bd   : >> { %v1498_v38 = vadd.f32 %v1497_v35, %v1212_v29 }
 0x1be   : >> { %v5595_v5 = vmov %v4999_v44 }
 0x1bf   : >> { %v1499_v63 = vadd.f32 %v1498_v38, %v1213_v53 }
 0x1c1   : >> { %1500 = vadd.xlane.f32.xlu2 %v1499_v63 }
 0x1c3   : >> { %v1249_v12 = vpop.xlane.xlu2 %1248 }
 0x1c4   : >> { %v5007_v41 = vadd.f32 %v3251_v41, %v1249_v12  }
 0x1c5   : >> { %v1321_v47 = vpop.xlane.xlu0 %1320 }
 0x1c6   : >> { %v5596_v6 = vmov %v5007_v41  ;;  %v5010_v33 = vadd.f32 %v3219_v33, %v1321_v47  }
 0x1c8   : >> { %v5597_v4 = vmov %v5010_v33 }
 0x1cb   : >> { %v1258_v44 = vpop.xlane.xlu2 %1257 }
 0x1cc   : >> { %v5013_v40 = vadd.f32 %v3247_v40, %v1258_v44   ;;  %v1240_v55 = vpop.xlane.xlu1 %1239  ;;  %v5631_v44 = vld [vmem:[#allocation51_spill] sm:$0xff] }
 0x1cd   : >> { %v5016_v42 = vadd.f32 %v3255_v42, %v1240_v55  }
 0x1ce   : >> { %v5598_v10 = vmov %v5013_v40 }
 0x1cf   : >> { %v5599_v2 = vmov %v5016_v42 }
 0x1d3   : >> { %v1285_v25 = vpop.xlane.xlu2 %1284 }
 0x1d4   : >> { %v5019_v37 = vadd.f32 %v5600_v60, %v1285_v25   ;;  %v1276_v43 = vpop.xlane.xlu1 %1275 }
 0x1d5   : >> { %v5022_v38 = vadd.f32 %v5602_v45, %v1276_v43   ;;  %v1348_v41 = vpop.xlane.xlu0 %1347  ;;  %v5633_v43 = vld [vmem:[#allocation48_spill] sm:$0xff] }
 0x1d6   : >> { %v5601_v51 = vmov %v5019_v37  ;;  %v5025_v30 = vadd.f32 %v5604_v0, %v1348_v41   ;;  %v5634_v41 = vld [vmem:[#allocation50_spill] sm:$0xff] }
 0x1d7   : >> { %v5603_v54 = vmov %v5022_v38  ;;  %v5630_v38 = vld [vmem:[#allocation55_spill] sm:$0xff] }
 0x1d8   : >> { %v5605_v46 = vmov %v5025_v30 }
 0x1db   : >> { %v1312_v33 = vpop.xlane.xlu2 %1311 }
 0x1dc   : >> { %v5028_v34 = vadd.f32 %v5606_v56, %v1312_v33   ;;  %v1303_v40 = vpop.xlane.xlu1 %1302  ;;  %v5635_v56 = vld [vmem:[#allocation49_spill] sm:$0xff] }
 0x1dd   : >> { %v5031_v35 = vadd.f32 %v5608_v14, %v1303_v40   ;;  %v1375_v42 = vpop.xlane.xlu0 %1374 }
 0x1de   : >> { %v5607_v50 = vmov %v5028_v34  ;;  %v5034_v27 = vadd.f32 %v5610_v62, %v1375_v42   ;;  %v5626_v34 = vld [vmem:[#allocation58_spill] sm:$0xff]  ;;  %v5637_v62 = vld [vmem:[#allocation47_spill] sm:$0xff] }
 0x1df   : >> { %v5609_v3 = vmov %v5031_v35  ;;  %v5628_v35 = vld [vmem:[#allocation54_spill] sm:$0xff] }
 0x1e0   : >> { %v5611_v49 = vmov %v5034_v27 }
 0x1e3   : >> { %v1339_v37 = vpop.xlane.xlu2 %1338 }
 0x1e4   : >> { %v5037_v31 = vadd.f32 %v5612_v24, %v1339_v37   ;;  %v1330_v1 = vpop.xlane.xlu1 %1329 }
 0x1e5   : >> { %v5040_v32 = vadd.f32 %v5614_v52, %v1330_v1   ;;  %v1402_v30 = vpop.xlane.xlu0 %1401 }
 0x1e6   : >> { %v5613_v48 = vmov %v5037_v31  ;;  %v5043_v24 = vadd.f32 %v5616_v57, %v1402_v30   ;;  %v5624_v31 = vld [vmem:[#allocation57_spill] sm:$0xff]  ;;  %v5657_v30 = vmov %v5605_v46 }
 0x1e7   : >> { %v5615_v13 = vmov %v5040_v32 }
 0x1e8   : >> { %v5617_v9 = vmov %v5043_v24  ;;  %v5638_v24 = vld [vmem:[#allocation45_spill] sm:$0xff] }
 0x1eb   : >> { %v1366_v58 = vpop.xlane.xlu2 %1365 }
 0x1ec   : >> { %v5046_v28 = vadd.f32 %v5618_v39, %v1366_v58   ;;  %v1357_v61 = vpop.xlane.xlu1 %1356  ;;  %v5666_v39 = vmov %v5593_v8 }
 0x1ed   : >> { %v5049_v29 = vadd.f32 %v5620_v23, %v1357_v61  }
 0x1ee   : >> { %v5619_v53 = vmov %v5046_v28 }
 0x1ef   : >> { %v5621_v12 = vmov %v5049_v29 }
 0x1f0   : >> { %v1429_v27 = vpop.xlane.xlu0 %1428  ;;  %v5689_v39 = vmov (%p5076_p12), %v5621_v12 }
 0x1f1   : >> { %v5052_v63 = vadd.f32 %v5622_v26, %v1429_v27   ;;  %v5654_v27 = vmov %v5611_v49 }
 0x1f3   : >> { %v5623_v47 = vmov %v5052_v63  ;;  %v5632_v63 = vld [vmem:[#allocation52_spill] sm:$0xff] }
 0x1f5   : >> { %v1393_v59 = vpop.xlane.xlu2 %1392 }
 0x1f6   : >> { %v5055_v25 = vadd.f32 %v5624_v31, %v1393_v59   ;;  %v5658_v31 = vmov %v5613_v48 }
 0x1f7   : > { %v5681_v31 = vmov (%p5076_p12), %v5623_v47 }
 0x1f8   : >> { %v5625_v45 = vmov %v5055_v25 }
 0x1fa   : >> { %v1384_v32 = vpop.xlane.xlu1 %1383 }
 0x1fb   : >> { %v5058_v26 = vadd.f32 %v5626_v34, %v1384_v32   ;;  %v5659_v32 = vmov %v5615_v13  ;;  %v5661_v34 = vmov %v5607_v50 }
 0x1fc   : > { %v5684_v34 = vmov (%p5076_p12), %v5617_v9 }
 0x1fd   : >> { %v5627_v14 = vmov %v5058_v26 }
 0x1fe   : >> { %v5653_v26 = vmov %v5627_v14 }
 0x201   : >> { %v1420_v36 = vpop.xlane.xlu2 %1419 }
 0x202   : >> { %v5061_v0 = vadd.f32 %v5628_v35, %v1420_v36   ;;  %v5662_v35 = vmov %v5609_v3  ;;  %v5663_v36 = vmov %v5594_v7 }
 0x203   : > { %v5685_v35 = vmov (%p5076_p12), %v5625_v45  ;;  %v5686_v36 = vmov (%p5076_p12), %v5627_v14 }
 0x204   : >> { %v5629_v1 = vmov %v5061_v0  ;;  %v5636_v0 = vld [vmem:[#allocation46_spill] sm:$0xff] }
 0x205   : > { %v5682_v32 = vmov (%p5076_p12), %v5629_v1 }
 0x206   : >> { %v1411_v28 = vpop.xlane.xlu1 %1410 }
 0x207   : >> { %v1523_v52 = vadd.f32 %v5630_v38, %v1411_v28   ;;  %v5655_v28 = vmov %v5619_v53  ;;  %v5665_v38 = vmov %v5603_v54 }
 0x208   : > { %v5688_v38 = vmov (%p5076_p12), %v5619_v53  ;;  %v5703_v53 = vmov (%p5076_p12), %v5592_v15 }
 0x209   : >> { %v5650_v23 = vmov %v1523_v52 }
 0x20b   : >> { %v1447_v29 = vpop.xlane.xlu2 %1446 }
 0x20c   : >> { %v1527_v16 = vadd.f32 %v5631_v44, %v1447_v29   ;;  %v5656_v29 = vmov %v5621_v12  ;;  %v5671_v44 = vmov %v5595_v5 }
 0x20d   : > { %v5694_v44 = vmov (%p5076_p12), %v5607_v50  ;;  %v5700_v50 = vmov (%p5076_p12), %v5598_v10 }
 0x20e   : >> { %v5646_v61 = vmov %v1527_v16  ;;  %v5679_v29 = vmov (%p5076_p12), %v1527_v16 }
 0x212   : >> { %v1438_v55 = vpop.xlane.xlu1 %1437 }
 0x213   : >> { %v1526_v17 = vadd.f32 %v5632_v63, %v1438_v55   ;;  %v5648_v63 = vmov %v5623_v47  ;;  %v5697_v47 = vmov (%p5076_p12), %v5601_v51 }
 0x215   : > { %v5680_v30 = vmov (%p5076_p12), %v1526_v17 }
 0x219   : >> { %v1474_v60 = vpop.xlane.xlu2 %1473 }
 0x21a   : >> { %v1530_v18 = vadd.f32 %v5633_v43, %v1474_v60   ;;  %v5670_v43 = vmov %v5592_v15 }
 0x21b   : > { %v5693_v43 = vmov (%p5076_p12), %v5597_v4 }
 0x21c   : >> { %v5643_v58 = vmov %v1530_v18  ;;  %v5676_v26 = vmov (%p5076_p12), %v1530_v18 }
 0x21d   : >> { %v1456_v25 = vpop.xlane.xlu0 %1455 }
 0x21e   : >> { %v1528_v19 = vadd.f32 %v5634_v41, %v1456_v25   ;;  %v5652_v25 = vmov %v5625_v45  ;;  %v5668_v41 = vmov %v5596_v6  ;;  %v5695_v45 = vmov (%p5076_p12), %v5609_v3 }
 0x21f   : > { %v5691_v41 = vmov (%p5076_p12), %v5613_v48  ;;  %v5698_v48 = vmov (%p5076_p12), %v5603_v54  ;;  %v5704_v54 = vmov (%p5076_p12), %v5595_v5 }
 0x220   : >> { %v5645_v60 = vmov %v1528_v19  ;;  %v5678_v28 = vmov (%p5076_p12), %v1528_v19 }
 0x223   : >> { %v1465_v33 = vpop.xlane.xlu1 %1464 }
 0x224   : >> { %v1529_v20 = vadd.f32 %v5635_v56, %v1465_v33   ;;  %v5660_v33 = vmov %v5597_v4 }
 0x225   : > { %v5683_v33 = vmov (%p5076_p12), %v1523_v52  ;;  %v5702_v52 = vmov (%p5076_p12), %v5599_v2 }
 0x226   : >> { %v5644_v59 = vmov %v1529_v20  ;;  %v5677_v27 = vmov (%p5076_p12), %v1529_v20 }
 0x22b   : >> { %v1492_v40 = vpop.xlane.xlu1 %1491 }
 0x22c   : >> { %v1532_v21 = vadd.f32 %v5636_v0, %v1492_v40   ;;  %v5649_v0 = vmov %v5629_v1  ;;  %v5667_v40 = vmov %v5598_v10 }
 0x22d   : > { %v5690_v40 = vmov (%p5076_p12), %v5605_v46  ;;  %v5696_v46 = vmov (%p5076_p12), %v5594_v7 }
 0x22e   : >> { %v1483_v42 = vpop.xlane.xlu0 %1482  ;;  %v5641_v56 = vmov %v1532_v21 }
 0x22f   : >> { %v1531_v22 = vadd.f32 %v5637_v62, %v1483_v42   ;;  %v5647_v62 = vmov %v1526_v17  ;;  %v5669_v42 = vmov %v5599_v2 }
 0x230   : > { %v5692_v42 = vmov (%p5076_p12), %v5615_v13 }
 0x231   : >> { %v5642_v57 = vmov %v1531_v22  ;;  %v5675_v25 = vmov (%p5076_p12), %v1531_v22 }
 0x233   : > { %377 = sbr.rel (!%p5076_p12) target bundleno = 124 (0x7c), region = 120 }
 0x234   : >> { %v1501_v37 = vpop.xlane.xlu2 %1500 }
 0x235   : >> { %v1533_v11 = vadd.f32 %v5638_v24, %v1501_v37   ;;  %v5651_v24 = vmov %v5617_v9  ;;  %v5664_v37 = vmov %v5601_v51  ;;  %v5701_v51 = vmov (%p5076_p12), %v5596_v6 }
 0x236   : > { %v5674_v24 = vmov (%p5076_p12), %v1532_v21  ;;  %v5687_v37 = vmov (%p5076_p12), %v5611_v49  ;;  %v5699_v49 = vmov (%p5076_p12), %v5593_v8 }
 0x237   : >> { %v5640_v55 = vmov %v1533_v11  ;;  %v5673_v23 = vmov (%p5076_p12), %v1533_v11 }
 0x238 PF: > { %v5705_v11 = vld [vmem:[#allocation33_spill] sm:$0xff]  ;;  %vm1571_vm7 = vcmask 130112   ;;  %vm1618_vm8 = vcmask 1041409   ;;  %vm1620_vm9 = vcmask 1042434   ;;  %vm1622_vm10 = vcmask 1043459   ;;  %s5706_s5 = sld [smem:[#allocation18_spill]]  ;;  %v3395_v54 = vphi %v3776_v54, %v5704_v54   ;;  %v3391_v53 = vphi %v3774_v53, %v5703_v53   ;;  %v3387_v52 = vphi %v3772_v52, %v5702_v52   ;;  %v3383_v51 = vphi %v3770_v51, %v5701_v51   ;;  %v3379_v50 = vphi %v3768_v50, %v5700_v50   ;;  %v3375_v49 = vphi %v3766_v49, %v5699_v49   ;;  %v3371_v48 = vphi %v3764_v48, %v5698_v48   ;;  %v3367_v47 = vphi %v3762_v47, %v5697_v47   ;;  %v3363_v46 = vphi %v3760_v46, %v5696_v46   ;;  %v3359_v45 = vphi %v3758_v45, %v5695_v45   ;;  %v3355_v44 = vphi %v3756_v44, %v5694_v44   ;;  %v3351_v43 = vphi %v3754_v43, %v5693_v43   ;;  %v3347_v42 = vphi %v3752_v42, %v5692_v42   ;;  %v3343_v41 = vphi %v3750_v41, %v5691_v41   ;;  %v3339_v40 = vphi %v3748_v40, %v5690_v40   ;;  %v3335_v39 = vphi %v3746_v39, %v5689_v39   ;;  %v3331_v38 = vphi %v3744_v38, %v5688_v38   ;;  %v3327_v37 = vphi %v3742_v37, %v5687_v37   ;;  %v3323_v36 = vphi %v3740_v36, %v5686_v36   ;;  %v3319_v35 = vphi %v3738_v35, %v5685_v35   ;;  %v3315_v34 = vphi %v3736_v34, %v5684_v34   ;;  %v3311_v33 = vphi %v3734_v33, %v5683_v33   ;;  %v3307_v32 = vphi %v3732_v32, %v5682_v32   ;;  %v3303_v31 = vphi %v3730_v31, %v5681_v31   ;;  %v3299_v30 = vphi %v3728_v30, %v5680_v30   ;;  %v3295_v29 = vphi %v3726_v29, %v5679_v29   ;;  %v3291_v28 = vphi %v3724_v28, %v5678_v28   ;;  %v3287_v27 = vphi %v3722_v27, %v5677_v27   ;;  %v3283_v26 = vphi %v3720_v26, %v5676_v26   ;;  %v3279_v25 = vphi %v3718_v25, %v5675_v25   ;;  %v3275_v24 = vphi %v3716_v24, %v5674_v24   ;;  %v3271_v23 = vphi %v3714_v23, %v5673_v23  }
 0x239   : > { %v1568_v16 = vperm.slane %v3395_v54, %v5705_v11  ;;  %v5326_v17 = vadd.s32 4294967288, %v5705_v11  ;;  %v1573_v18 = vperm.slane %v3387_v52, %v5705_v11  ;;  %v1576_v19 = vperm.slane %v3379_v50, %v5705_v11  ;;  %v1534_v52 = vld [vmem:[%s3636_s13] sm:$0xff] }
 0x23a   : > { %v1579_v20 = vperm.slane %v3371_v48, %v5705_v11  ;;  %v1582_v21 = vperm.slane %v3363_v46, %v5705_v11  ;;  %v1585_v22 = vperm.slane %v3355_v44, %v5705_v11  ;;  %v1588_v10 = vperm.slane %v3347_v42, %v5705_v11 }
 0x23b   : > { %v1570_v15 = vperm.slane %v3391_v53, %v5326_v17  ;;  %v1574_v8 = vperm.slane %v3383_v51, %v5326_v17  ;;  %v1577_v7 = vperm.slane %v3375_v49, %v5326_v17  ;;  %v1580_v5 = vperm.slane %v3367_v47, %v5326_v17 }
 0x23c   : > { %v1583_v6 = vperm.slane %v3359_v45, %v5326_v17  ;;  %v1586_v4 = vperm.slane %v3351_v43, %v5326_v17  ;;  %v1589_v2 = vperm.slane %v3343_v41, %v5326_v17  ;;  %v1591_v13 = vperm.slane %v3339_v40, %v5705_v11 }
 0x23d   : > { %v1572_v54 = vsel %vm1571_vm7, %v1570_v15, %v1568_v16  ;;  %v1575_v46 = vsel %vm1571_vm7, %v1574_v8, %v1573_v18  ;;  %v1578_v50 = vsel %vm1571_vm7, %v1577_v7, %v1576_v19  ;;  %v1581_v51 = vsel %vm1571_vm7, %v1580_v5, %v1579_v20 }
 0x23e   : > { %v1584_v3 = vsel %vm1571_vm7, %v1583_v6, %v1582_v21  ;;  %v1587_v49 = vsel %vm1571_vm7, %v1586_v4, %v1585_v22  ;;  %v1590_v48 = vsel %vm1571_vm7, %v1589_v2, %v1588_v10  ;;  %v1592_v57 = vperm.slane %v3335_v39, %v5326_v17  ;;  %p1948_p3 = scmp.ne.s32.totalorder %s5706_s5, 3 }
 0x23f   : > { %v1619_v9 = vsel %vm1618_vm8, %v1575_v46, %v1572_v54  ;;  %vm1624_vm11 = vcmask 1044484   ;;  %vm1626_vm12 = vcmask 1045509   ;;  %vm1628_vm13 = vcmask 1046534  }
 0x240   : > { %v1593_v58 = vsel %vm1571_vm7, %v1592_v57, %v1591_v13  ;;  %v1621_v53 = vsel %vm1620_vm9, %v1578_v50, %v1619_v9  ;;  %vm1630_vm4 = vcmask 1047559   ;;  %vm1643_vm15 = vcmask 130048  }
 0x241   : > { %v1623_v61 = vsel %vm1622_vm10, %v1581_v51, %v1621_v53  ;;  %v1594_v39 = vperm.slane %v3331_v38, %v5705_v11  ;;  %v1595_v12 = vperm.slane %v3327_v37, %v5326_v17  ;;  %v1597_v47 = vperm.slane %v3323_v36, %v5705_v11 }
 0x242   : > { %v1625_v59 = vsel %vm1624_vm11, %v1584_v3, %v1623_v61  ;;  %v1598_v45 = vperm.slane %v3319_v35, %v5326_v17  ;;  %v1600_v14 = vperm.slane %v3315_v34, %v5705_v11  ;;  %v1601_v1 = vperm.slane %v3311_v33, %v5326_v17 }
 0x243   : > { %v1627_v38 = vsel %vm1626_vm12, %v1587_v49, %v1625_v59  ;;  %v1596_v44 = vsel %vm1571_vm7, %v1595_v12, %v1594_v39  ;;  %v1603_v55 = vperm.slane %v3307_v32, %v5705_v11  ;;  %v1604_v36 = vperm.slane %v3303_v31, %v5326_v17 }
 0x244   : > { %v1629_v63 = vsel %vm1628_vm13, %v1590_v48, %v1627_v38  ;;  %v1599_v35 = vsel %vm1571_vm7, %v1598_v45, %v1597_v47  ;;  %v1602_v34 = vsel %vm1571_vm7, %v1601_v1, %v1600_v14  ;;  %v1606_v60 = vperm.slane %v3299_v30, %v5705_v11 }
 0x245   : > { %v1631_v43 = vsel %vm1630_vm4, %v1593_v58, %v1629_v63  ;;  %v1605_v41 = vsel %vm1571_vm7, %v1604_v36, %v1603_v55  ;;  %v1607_v32 = vperm.slane %v3295_v29, %v5326_v17  ;;  %v1609_v31 = vperm.slane %v3291_v28, %v5705_v11 }
 0x246   : > { %v1641_v33 = vadd.f32 %v1631_v43, %v1534_v52  ;;  %v1610_v56 = vperm.slane %v3287_v27, %v5326_v17  ;;  %v1612_v40 = vperm.slane %v3283_v26, %v5705_v11  ;;  %v1613_v30 = vperm.slane %v3279_v25, %v5326_v17 }
 0x247   : > { %v1608_v0 = vsel %vm1571_vm7, %v1607_v32, %v1606_v60  ;;  %v1615_v29 = vperm.slane %v3275_v24, %v5705_v11  ;;  %v1616_v28 = vperm.slane %v3271_v23, %v5326_v17  ;;  %v1632_v42 = vsel %vm1618_vm8, %v1599_v35, %v1596_v44  ;;  %v1535_v24 = vld [vmem:[%s3636_s13 + $0x8] sm:$0xff] }
 0x248   : > { %1644 = vst.msk [vmem:[%s3636_s13] sm:$0xff] %vm1643_vm15, %v1641_v33  ;;  %v1611_v27 = vsel %vm1571_vm7, %v1610_v56, %v1609_v31  ;;  %v1633_v26 = vsel %vm1620_vm9, %v1602_v34, %v1632_v42  ;;  %v1614_v62 = vsel %vm1571_vm7, %v1613_v30, %v1612_v40 }
 0x249   : > { %v1634_v25 = vsel %vm1622_vm10, %v1605_v41, %v1633_v26  ;;  %v1617_v37 = vsel %vm1571_vm7, %v1616_v28, %v1615_v29 }
 0x24a   : > { %v1635_v16 = vsel %vm1624_vm11, %v1608_v0, %v1634_v25 }
 0x24b   : > { %v1636_v11 = vsel %vm1626_vm12, %v1611_v27, %v1635_v16 }
 0x24c   : > { %v1637_v23 = vsel %vm1628_vm13, %v1614_v62, %v1636_v11  ;;  %1649 = sbr.rel (%p1948_p3) target bundleno = 603 (0x25b), region = 59 }
 0x24d   : > { %v1638_v17 = vsel %vm1630_vm4, %v1617_v37, %v1637_v23 }
 0x24e   : > { %v1642_v18 = vadd.f32 %v1638_v17, %v1535_v24 }
 0x250   : > { %1645 = vst.msk [vmem:[%s3636_s13 + $0x8] sm:$0xff] %vm1643_vm15, %v1642_v18 }
 0x251   : > { %v1650_v19 = vld [vmem:[%s3636_s13] sm:$0xff] }
 0x252   : > { %v1652_v21 = vmul.f32 0.1, %v1650_v19 }
 0x254   : > { %1654 = vst.msk [vmem:[%s3636_s13] sm:$0xff] %vm1643_vm15, %v1652_v21 }
 0x257   : > { %v1651_v20 = vld [vmem:[%s3636_s13 + $0x8] sm:$0xff] }
 0x258   : > { %v1653_v22 = vmul.f32 0.1, %v1651_v20 }
 0x25a   : > { %1655 = vst.msk [vmem:[%s3636_s13 + $0x8] sm:$0xff] %vm1643_vm15, %v1653_v22 }
 0x25b PF: > { %s5707_s30 = sld [smem:[#allocation19_spill]]  ;;  %s1673_s3 = sshll.u32 %s3636_s13, 4  ;;  %s1674_s3 = int_to_ptr.vmem [resolvable:$true] %s1673_s3 }
 0x25c   : > { %s5709_s23 = sld [smem:[#allocation71_spill]]  ;;  %s1657_s10 = scalar_lea.sflag [#allocation7], %s3610_s19 }
 0x261   : > { %s1954_s24 = sshll.u32 %s5707_s30, 4 }
 0x262   : > { %s1672_s25 = scalar_lea.hbm %s5709_s23, %s1954_s24  ;;  %s2763_s11 = scalar_lea.hbm %s5709_s23, 32 }
 0x263   : > { %s1675_s16 = sshll.u32 %s1672_s25, 4  ;;  %s1676_s16 = int_to_ptr.hbm [resolvable:$true] %s1675_s16 }
 0x264   : > { %s2757_s20 = sshra.s32 %s1676_s16, 4  ;;  %s2758_s20 = int_to_ptr.hbm [resolvable:$true] %s2757_s20 }
 0x265   : > { %s2759_s0 = scalar_lea.hbm %s2758_s20, 16  ;;  %p2764_p9 = scmp.lt.s32.totalorder %s2758_s20, %s5709_s23 }
 0x266   : > { %p2760_p4 = scmp.ne.s32.totalorder %s2758_s20, %s2759_s0  ;;  %p2765_p11 = scmp.lt.s32.totalorder %s2763_s11, %s2759_s0 }
 0x268   : > { %p2761_p7 = pnand %p2760_p4, %p3582_p2  ;;  %p2766_p1 = por %p2765_p11, %p2764_p9 }
 0x26a   : > { %p2762_p8 = pneg %p2761_p7 }
 0x26c   : > { %p2767_p13 = pnand %p2766_p1, %p2762_p8 }
 0x26e   : > { %2770 = shalt.err (!%p2767_p13)
}
 0x26f   : > { %s3402_s19 = smov 128   ;;  %s3403_s13 = smov 8  }
 0x270   : > { %1978 = dma.vmem_to_hbm [thread:$0]  (%p3582_p2), %s1674_s3, 256, %s1676_s16, %s1657_s10, %s3402_s19, %s3402_s19, %s3403_s13  }
 0x271 PF: > { %s5710_s14 = sld [smem:[#allocation17_spill]]  ;;  %p1995_p0 = scmp.ge.s32.totalorder %s3135_s9, 2 }
 0x273   : > { %p1991_p6 = pnand %p1995_p0, %p3510_p5 }
 0x275   : > { %p1992_p10 = pneg %p1991_p6 }
 0x277   : > { %s1690_s30 = sand.u32 1, %s5710_s14  }
 0x278   : > { %s1691_s24 = scalar_lea.sflag [#allocation7], %s1690_s30 }
 0x279   : > { %3090 = dma.done.wait (%p1992_p10), %s1691_s24, 256  }
 0x27a   : > { %3092 = vsyncadd (%p1992_p10), %s1691_s24, 4294967040  ;;  %s37_s9 = sadd.s32 1, %s3135_s9   ;;  %s5712_s18 = sld [smem:[#allocation21_spill]] }
 0x27b   : > { %p34_p12 = scmp.ge.s32.totalorder %s37_s9, 10   ;;  %s5713_s15 = sld [smem:[#allocation22_spill]] }
 0x27c   : > { %s5714_s0 = smov %s3099_s26  ;;  %s5715_s26 = smov %s3103_s1 }
 0x27d   : > { %s5716_s1 = smov %s3595_s2  ;;  %s5717_s27 = smov %s3111_s28 }
 0x27e   : > { %s5718_s28 = smov %s3115_s29  ;;  %s5719_s29 = smov %s3592_s22 }
 0x27f   : > { %s5720_s30 = smov %s3127_s7  ;;  %s5721_s6 = smov %s3131_s8 }
 0x280   : > { %s5722_s7 = smov %s5712_s18  ;;  %36 = sbr.rel (!%p34_p12) target bundleno = 20 (0x14), region = 131 }
 0x281   : > { %s5723_s8 = smov %s5713_s15 }
 0x285   :  { %1697 = vsyncpa [#allocation6], 1 }
 0x286   :  { %1699 = vsyncpa [#allocation6 + $0x1], 1 }
 0x287   :  { %1700 = vsyncpa [#allocation9], 1 }
 0x288   :  { %1702 = vsyncpa [#allocation9 + $0x1], 1 }
 0x289   :  { %1703 = vsyncpa [#allocation7], 1 }
 0x28a   :  { %1705 = vsyncpa [#allocation7 + $0x1], 1 }

</bundles_post_ra>
